<compile_context>
chip_gen: v6e
topology: v6e:2x2x1
jax: 0.10.0
libtpu: 0.0.40
codegen_flags: <defaults>
</compile_context>

<pallas_src>
import functools

import jax
import jax.numpy as jnp
from jax import lax
from jax.experimental import pallas as pl
from jax.experimental.pallas import tpu as pltpu


# ----------------------------------------------------------------------------
# LSTM cell on combined-direction (2B, 4H) gate tiles (gate order i, f, g, o = PyTorch)
# ----------------------------------------------------------------------------
def _lstm_cell(gates, c):
    """gates: (R, 4H) pre-activations. c: (R, H). Rows are independent lanes of work."""
    H = c.shape[-1]
    sg = jax.nn.sigmoid(gates)                    # full-width (R, 4H=128) sigmoid on EUP
    i = sg[:, 0 * H:1 * H]
    f = sg[:, 1 * H:2 * H]
    o = sg[:, 3 * H:4 * H]
    g = jnp.tanh(gates[:, 2 * H:3 * H])
    c_new = f * c + i * g
    h_new = o * jnp.tanh(c_new)
    return h_new, c_new


# ----------------------------------------------------------------------------
# Fused kernel: 2 bidirectional LSTM layers + Linear(2H,1) + sigmoid
# ----------------------------------------------------------------------------
def _bilstm2_fused_kernel(x_ref,      # (T*2B, 2C)  block-diag staged input rows
                          wih0_ref,   # (2C, 4H)    [wih0_f ; wih0_b]
                          b0_ref,     # (2B, 4H)    rows 0:B = b0_f, rows B:2B = b0_b
                          whh0_ref,   # (2H, 4H)    [whh0_f ; whh0_b]  (block-diag RHS)
                          wih1_ref,   # (4H, 4H)    [wih1_f ; wih1_b]
                          b1_ref,     # (2B, 4H)
                          whh1_ref,   # (H, 4H)     layer-1 fwd only (bwd half is dead)
                          fcw_ref,    # (1, 2H)
                          fcb_ref,    # (1, 1)
                          out_ref,    # (B, 1)
                          *, B, T, H, mxu_dtype):
    f32 = jnp.float32
    R = 2 * B                 # rows per time-block (fwd batch + bwd batch), = 8 at B=4
    G = 4 * H

    # ---- static masks (built once; compile-time foldable iota+cmp)
    r2 = lax.broadcasted_iota(jnp.int32, (R, 2 * H), 0)
    c2 = lax.broadcasted_iota(jnp.int32, (R, 2 * H), 1)
    dmask = ((r2 < B) == (c2 < H)).astype(f32)          # (2B, 2H): [h_f|0 ; 0|h_b] selector
    r4 = lax.broadcasted_iota(jnp.int32, (R, G), 0)
    c4 = lax.broadcasted_iota(jnp.int32, (R, G), 1)
    umask = ((r4 < B) == (c4 < 2 * H)).astype(f32)      # (2B, 4H): [u|0 ; 0|u] selector

    # ---- cast MXU operands once (elementwise math and c-state stay f32)
    x_bd = x_ref[...].astype(mxu_dtype)
    wih0 = wih0_ref[...].astype(mxu_dtype)
    whh0 = whh0_ref[...].astype(mxu_dtype)
    wih1 = wih1_ref[...].astype(mxu_dtype)
    whh1 = whh1_ref[...].astype(mxu_dtype)

    # ---- layer 0: hoisted projection lands directly in the staged layout
    #      block t: rows 0:B = fwd gates(t), rows B:2B = bwd gates(T-1-t)
    gx0 = jnp.dot(x_bd, wih0, preferred_element_type=f32)      # (T*2B, 4H)
    b0 = b0_ref[...]

    h = jnp.zeros((R, H), f32)
    c = jnp.zeros((R, H), f32)
    hs = []                                   # per-step (2B, H): [h_f(t) ; h_b(T-1-t)]
    for t in range(T):                        # static, fully unrolled serial recurrence
        lhs = (jnp.concatenate([h, h], axis=-1) * dmask).astype(mxu_dtype)   # (2B, 2H)
        gates = gx0[t * R:(t + 1) * R] + b0 + jnp.dot(
            lhs, whh0, preferred_element_type=f32)                           # (8, 128) aligned
        h, c = _lstm_cell(gates, c)
        hs.append(h)

    # ---- assemble layer-1 block-diag staged input from the per-step values (no scratch,
    #      no masked stores): block t = [u(t)|0 ; 0|u(T-1-t)], u(t) = [h_f(t) | h_b(t)]
    swapped = [jnp.concatenate([hv[B:], hv[:B]], axis=0) for hv in hs]   # swap fwd/bwd rows
    blocks = []
    for t in range(T):
        A = hs[t]                       # top: h_f(t)        bottom: h_b(T-1-t)
        S = swapped[T - 1 - t]          # top: h_b(t)        bottom: h_f(T-1-t)
        blocks.append(jnp.concatenate([A, S, S, A], axis=-1) * umask)    # (2B, 4H)
    u_bd = jnp.concatenate(blocks, axis=0).astype(mxu_dtype)            # (T*2B, 4H)

    # ---- layer 1: hoisted projection (staged layout again)
    gx1 = jnp.dot(u_bd, wih1, preferred_element_type=f32)               # (T*2B, 4H)
    b1 = b1_ref[...]

    h1 = jnp.zeros((R, H), f32)
    c1 = jnp.zeros((R, H), f32)
    hb_last = None
    for t in range(T):
        # fwd rows need h1_fwd @ whh1_f; bwd rows only matter at t=0 where h1==0, so the
        # (wrong) recurrent term on later bwd steps is harmless and whh1_b is never needed.
        gates = gx1[t * R:(t + 1) * R] + b1 + jnp.dot(
            h1.astype(mxu_dtype), whh1, preferred_element_type=f32)
        h1, c1 = _lstm_cell(gates, c1)
        if t == 0:
            hb_last = h1[B:]            # layer-1 bwd output at original time T-1

    # ---- FC head: sigmoid(last @ w + b); tiny at B=4 (see TODO for lane-dense form)
    last = jnp.concatenate([h1[:B], hb_last], axis=-1)                  # (B, 2H) == lstm_out[:, -1, :]
    logit = jnp.sum(last * fcw_ref[...], axis=-1, keepdims=True) + fcb_ref[...]
    out_ref[...] = jax.nn.sigmoid(logit)


# ----------------------------------------------------------------------------
# Wrapper: batch-first (B, T, C) in, (B,) out — same semantics as the PyTorch module
# ----------------------------------------------------------------------------
def bilstm_forward(x_btc, params, *, mxu_dtype=jnp.float32):
    B, T, C = x_btc.shape
    l0, l1 = params["layers"]
    H = l0["f"]["w_hh"].shape[0]

    # ---- boundary layout plumbing (XLA side): block-diagonal staged input rows
    #      block t rows 0:B = [x(:,t,:), 0], rows B:2B = [0, x(:,T-1-t,:)]
    xt = jnp.transpose(x_btc.astype(jnp.float32), (1, 0, 2))            # (T, B, C)
    z = jnp.zeros_like(xt)
    x_bd = jnp.concatenate([jnp.concatenate([xt, z], axis=-1),
                            jnp.concatenate([z, xt[::-1]], axis=-1)], axis=1)
    x_bd = x_bd.reshape(T * 2 * B, 2 * C)                               # (T*2B, 2C)

    # ---- weight packing: block-diag recurrent RHS + row-staged biases
    wih0_bd = jnp.concatenate([l0["f"]["w_ih"], l0["b"]["w_ih"]], axis=0)   # (2C, 4H)
    whh0_bd = jnp.concatenate([l0["f"]["w_hh"], l0["b"]["w_hh"]], axis=0)   # (2H, 4H)
    b0_st = jnp.concatenate([jnp.broadcast_to(l0["f"]["b"], (B, 4 * H)),
                             jnp.broadcast_to(l0["b"]["b"], (B, 4 * H))], axis=0)
    wih1_bd = jnp.concatenate([l1["f"]["w_ih"], l1["b"]["w_ih"]], axis=0)   # (4H, 4H)
    whh1_f = l1["f"]["w_hh"]        # (H, 4H); layer-1 bwd recurrent weight is dead -> dropped
    b1_st = jnp.concatenate([jnp.broadcast_to(l1["f"]["b"], (B, 4 * H)),
                             jnp.broadcast_to(l1["b"]["b"], (B, 4 * H))], axis=0)

    args = (x_bd, wih0_bd, b0_st, whh0_bd, wih1_bd, b1_st, whh1_f,
            params["fc_w"], params["fc_b"])

    # explicit scoped-VMEM budget from actual buffer sizes (feedback item); clamp to v7x phys
    io_bytes = sum(int(a.size) * a.dtype.itemsize for a in args) + B * 4
    inter_bytes = 12 * (T * 2 * B) * max(4 * H, 128) * 4     # gx0/gx1/u_bd/hs/x casts, generous
    vmem_limit = int(min(max(4 * (io_bytes + inter_bytes), 32 << 20), 64 << 20))

    def full_spec(shape):
        return pl.BlockSpec(shape, lambda: tuple(0 for _ in shape))

    out = pl.pallas_call(
        functools.partial(_bilstm2_fused_kernel, B=B, T=T, H=H, mxu_dtype=mxu_dtype),
        out_shape=jax.ShapeDtypeStruct((B, 1), jnp.float32),
        in_specs=[full_spec(a.shape) for a in args],
        out_specs=pl.BlockSpec((B, 1), lambda: (0, 0)),
        compiler_params=pltpu.CompilerParams(vmem_limit_bytes=vmem_limit),
    )(*args)
    return jnp.squeeze(out)   # matches torch .squeeze()


# ----------------------------------------------------------------------------
# Parameter init (PyTorch-style uniform(-1/sqrt(H), 1/sqrt(H)); gate order i,f,g,o)
# ----------------------------------------------------------------------------
def init_params(key, input_channels, hidden, num_layers=2):
    assert num_layers == 2, "fused kernel is written for the module default of 2 layers"
    bound = 1.0 / float(hidden) ** 0.5

    def direction(k, d_in):
        k1, k2, k3, k4 = jax.random.split(k, 4)
        w_ih = jax.random.uniform(k1, (d_in, 4 * hidden), jnp.float32, -bound, bound)
        w_hh = jax.random.uniform(k2, (hidden, 4 * hidden), jnp.float32, -bound, bound)
        b = (jax.random.uniform(k3, (4 * hidden,), jnp.float32, -bound, bound)
             + jax.random.uniform(k4, (4 * hidden,), jnp.float32, -bound, bound))
        return {"w_ih": w_ih, "w_hh": w_hh, "b": b}

    layers = []
    d_in = input_channels
    for _ in range(2):
        key, kf, kb = jax.random.split(key, 3)
        layers.append({"f": direction(kf, d_in), "b": direction(kb, d_in)})
        d_in = 2 * hidden

    kf2 = 1.0 / float(2 * hidden) ** 0.5
    key, k5, k6 = jax.random.split(key, 3)
    fc_w = jax.random.uniform(k5, (1, 2 * hidden), jnp.float32, -kf2, kf2)
    fc_b = jax.random.uniform(k6, (1, 1), jnp.float32, -kf2, kf2)
    return {"layers": layers, "fc_w": fc_w, "fc_b": fc_b}


# ----------------------------------------------------------------------------
# Pure-JAX reference (correctness check)
# ----------------------------------------------------------------------------
def _ref_lstm_dir(x_tbd, w_ih, w_hh, b):
    H = w_hh.shape[0]
    B = x_tbd.shape[1]

    def step(carry, x_t):
        h, c = carry
        gates = x_t @ w_ih + h @ w_hh + b
        i = jax.nn.sigmoid(gates[:, :H])
        f = jax.nn.sigmoid(gates[:, H:2 * H])
        g = jnp.tanh(gates[:, 2 * H:3 * H])
        o = jax.nn.sigmoid(gates[:, 3 * H:])
        c = f * c + i * g
        h = o * jnp.tanh(c)
        return (h, c), h

    _, hs = lax.scan(step, (jnp.zeros((B, H)), jnp.zeros((B, H))), x_tbd)
    return hs


def ref_forward(x_btc, p):
    x = jnp.transpose(x_btc.astype(jnp.float32), (1, 0, 2))   # (T, B, C)
    for layer in p["layers"]:
        hf = _ref_lstm_dir(x, layer["f"]["w_ih"], layer["f"]["w_hh"], layer["f"]["b"])
        hb = _ref_lstm_dir(x[::-1], layer["b"]["w_ih"], layer["b"]["w_hh"], layer["b"]["b"])[::-1]
        x = jnp.concatenate([hf, hb], axis=-1)
    last = x[-1]                                               # (B, 2H)
    return jnp.squeeze(jax.nn.sigmoid(last @ p["fc_w"].T + p["fc_b"]))


# ----------------------------------------------------------------------------
if __name__ == "__main__":
    B, T, C, H = 4, 8, 19, 32   # num_windows, time_steps, input_channels, lstm_hidden_size

    key = jax.random.PRNGKey(0)
    key, xkey, pkey = jax.random.split(key, 3)
    x = jax.random.normal(xkey, (B, T, C), jnp.float32)
    params = init_params(pkey, C, H, num_layers=2)

    ref = jax.block_until_ready(ref_forward(x, params))

    # f32 MXU operands: tight check
    out = jax.block_until_ready(jax.jit(bilstm_forward)(x, params))
    assert out.shape == (B,), out.shape
    assert jnp.allclose(out, ref, atol=1e-4, rtol=1e-4), (out, ref)

    # bf16 MXU operands (v6e/v7x throughput / VMEM lever; elementwise stays f32).
    # bf16 has ~8 mantissa bits -> per-gate relative error ~4e-3 accumulated over 8 steps
    # and 2 layers; 5e-2 absolute on a sigmoid output is a justified, still-meaningful bound.
    out_bf16 = jax.block_until_ready(
        jax.jit(functools.partial(bilstm_forward, mxu_dtype=jnp.bfloat16))(x, params))
    assert jnp.allclose(out_bf16, ref, atol=5e-2, rtol=0.0), (out_bf16, ref)

    print("KERNEL_OK")
</pallas_src>

<mosaic_0001>
module attributes {stable_mosaic.version = 11 : i64} {
  func.func @_bilstm2_fused_kernel(%arg0: memref<64x38xf32, #tpu.memory_space<vmem>>, %arg1: memref<38x128xf32, #tpu.memory_space<vmem>>, %arg2: memref<8x128xf32, #tpu.memory_space<vmem>>, %arg3: memref<64x128xf32, #tpu.memory_space<vmem>>, %arg4: memref<128x128xf32, #tpu.memory_space<vmem>>, %arg5: memref<8x128xf32, #tpu.memory_space<vmem>>, %arg6: memref<32x128xf32, #tpu.memory_space<vmem>>, %arg7: memref<1x64xf32, #tpu.memory_space<vmem>>, %arg8: memref<1x1xf32, #tpu.memory_space<vmem>>, %arg9: memref<4x1xf32, #tpu.memory_space<vmem>>) attributes {dimension_semantics = [], scalar_prefetch = 0 : i64, scratch_operands = 0 : i64, tpu.core_type = #tpu.core_type<tc>} {
    %0 = tpu.iota {dimensions = array<i32: 0>} : vector<8x64xi32>
    %1 = tpu.iota {dimensions = array<i32: 1>} : vector<8x64xi32>
    %c4_i32 = arith.constant 4 : i32
    %2 = vector.broadcast %c4_i32 : i32 to vector<8x64xi32>
    %3 = arith.cmpi slt, %0, %2 : vector<8x64xi32>
    %c32_i32 = arith.constant 32 : i32
    %4 = vector.broadcast %c32_i32 : i32 to vector<8x64xi32>
    %5 = arith.cmpi slt, %1, %4 : vector<8x64xi32>
    %6 = arith.xori %3, %5 : vector<8x64xi1>
    %cst = arith.constant dense<true> : vector<8x64xi1>
    %7 = arith.xori %6, %cst : vector<8x64xi1>
    %8 = arith.extui %7 : vector<8x64xi1> to vector<8x64xi32>
    %9 = arith.sitofp %8 : vector<8x64xi32> to vector<8x64xf32>
    %10 = tpu.iota {dimensions = array<i32: 0>} : vector<8x128xi32>
    %11 = tpu.iota {dimensions = array<i32: 1>} : vector<8x128xi32>
    %c4_i32_0 = arith.constant 4 : i32
    %12 = vector.broadcast %c4_i32_0 : i32 to vector<8x128xi32>
    %13 = arith.cmpi slt, %10, %12 : vector<8x128xi32>
    %c64_i32 = arith.constant 64 : i32
    %14 = vector.broadcast %c64_i32 : i32 to vector<8x128xi32>
    %15 = arith.cmpi slt, %11, %14 : vector<8x128xi32>
    %16 = arith.xori %13, %15 : vector<8x128xi1>
    %cst_1 = arith.constant dense<true> : vector<8x128xi1>
    %17 = arith.xori %16, %cst_1 : vector<8x128xi1>
    %18 = arith.extui %17 : vector<8x128xi1> to vector<8x128xi32>
    %19 = arith.sitofp %18 : vector<8x128xi32> to vector<8x128xf32>
    %c0 = arith.constant 0 : index
    %c0_2 = arith.constant 0 : index
    %20 = vector.load %arg0[%c0, %c0_2] : memref<64x38xf32, #tpu.memory_space<vmem>>, vector<64x38xf32>
    %c0_3 = arith.constant 0 : index
    %c0_4 = arith.constant 0 : index
    %21 = vector.load %arg1[%c0_3, %c0_4] : memref<38x128xf32, #tpu.memory_space<vmem>>, vector<38x128xf32>
    %c0_5 = arith.constant 0 : index
    %c0_6 = arith.constant 0 : index
    %22 = vector.load %arg3[%c0_5, %c0_6] : memref<64x128xf32, #tpu.memory_space<vmem>>, vector<64x128xf32>
    %c0_7 = arith.constant 0 : index
    %c0_8 = arith.constant 0 : index
    %23 = vector.load %arg4[%c0_7, %c0_8] : memref<128x128xf32, #tpu.memory_space<vmem>>, vector<128x128xf32>
    %c0_9 = arith.constant 0 : index
    %c0_10 = arith.constant 0 : index
    %24 = vector.load %arg6[%c0_9, %c0_10] : memref<32x128xf32, #tpu.memory_space<vmem>>, vector<32x128xf32>
    %cst_11 = arith.constant dense<0.000000e+00> : vector<64x128xf32>
    %25 = tpu.matmul %20, %21, %cst_11 {dimension_numbers = #tpu.dot_dimension_numbers<[1], [0], [0], [1], [0, 0, 1, 1], [], []>} : vector<64x38xf32>, vector<38x128xf32>, vector<64x128xf32> -> vector<64x128xf32>
    %c0_12 = arith.constant 0 : index
    %c0_13 = arith.constant 0 : index
    %26 = vector.load %arg2[%c0_12, %c0_13] : memref<8x128xf32, #tpu.memory_space<vmem>>, vector<8x128xf32>
    %cst_14 = arith.constant 0.000000e+00 : f32
    %27 = vector.broadcast %cst_14 : f32 to vector<8x32xf32>
    %cst_15 = arith.constant 0.000000e+00 : f32
    %28 = vector.broadcast %cst_15 : f32 to vector<8x32xf32>
    %29 = tpu.concatenate %27, %27 in 1 : vector<8x32xf32>, vector<8x32xf32> -> vector<8x64xf32>
    %30 = arith.mulf %29, %9 : vector<8x64xf32>
    %31 = vector.extract_strided_slice %25 {offsets = [0, 0], sizes = [8, 128], strides = [1, 1]} : vector<64x128xf32> to vector<8x128xf32>
    %32 = arith.addf %31, %26 : vector<8x128xf32>
    %cst_16 = arith.constant dense<0.000000e+00> : vector<8x128xf32>
    %33 = tpu.matmul %30, %22, %cst_16 {dimension_numbers = #tpu.dot_dimension_numbers<[1], [0], [0], [1], [0, 0, 1, 1], [], []>} : vector<8x64xf32>, vector<64x128xf32>, vector<8x128xf32> -> vector<8x128xf32>
    %34 = arith.addf %32, %33 : vector<8x128xf32>
    %35 = arith.negf %34 : vector<8x128xf32>
    %36 = math.exp %35 : vector<8x128xf32>
    %cst_17 = arith.constant 1.000000e+00 : f32
    %37 = vector.broadcast %cst_17 : f32 to vector<8x128xf32>
    %38 = arith.addf %37, %36 : vector<8x128xf32>
    %39 = arith.divf %37, %38 : vector<8x128xf32>
    %40 = vector.extract_strided_slice %39 {offsets = [0, 0], sizes = [8, 32], strides = [1, 1]} : vector<8x128xf32> to vector<8x32xf32>
    %41 = vector.extract_strided_slice %39 {offsets = [0, 32], sizes = [8, 32], strides = [1, 1]} : vector<8x128xf32> to vector<8x32xf32>
    %42 = vector.extract_strided_slice %39 {offsets = [0, 96], sizes = [8, 32], strides = [1, 1]} : vector<8x128xf32> to vector<8x32xf32>
    %43 = vector.extract_strided_slice %34 {offsets = [0, 64], sizes = [8, 32], strides = [1, 1]} : vector<8x128xf32> to vector<8x32xf32>
    %44 = math.tanh %43 : vector<8x32xf32>
    %45 = arith.mulf %41, %28 : vector<8x32xf32>
    %46 = arith.mulf %40, %44 : vector<8x32xf32>
    %47 = arith.addf %45, %46 : vector<8x32xf32>
    %48 = math.tanh %47 : vector<8x32xf32>
    %49 = arith.mulf %42, %48 : vector<8x32xf32>
    %50 = tpu.concatenate %49, %49 in 1 : vector<8x32xf32>, vector<8x32xf32> -> vector<8x64xf32>
    %51 = arith.mulf %50, %9 : vector<8x64xf32>
    %52 = vector.extract_strided_slice %25 {offsets = [8, 0], sizes = [8, 128], strides = [1, 1]} : vector<64x128xf32> to vector<8x128xf32>
    %53 = arith.addf %52, %26 : vector<8x128xf32>
    %cst_18 = arith.constant dense<0.000000e+00> : vector<8x128xf32>
    %54 = tpu.matmul %51, %22, %cst_18 {dimension_numbers = #tpu.dot_dimension_numbers<[1], [0], [0], [1], [0, 0, 1, 1], [], []>} : vector<8x64xf32>, vector<64x128xf32>, vector<8x128xf32> -> vector<8x128xf32>
    %55 = arith.addf %53, %54 : vector<8x128xf32>
    %56 = arith.negf %55 : vector<8x128xf32>
    %57 = math.exp %56 : vector<8x128xf32>
    %cst_19 = arith.constant 1.000000e+00 : f32
    %58 = vector.broadcast %cst_19 : f32 to vector<8x128xf32>
    %59 = arith.addf %58, %57 : vector<8x128xf32>
    %60 = arith.divf %58, %59 : vector<8x128xf32>
    %61 = vector.extract_strided_slice %60 {offsets = [0, 0], sizes = [8, 32], strides = [1, 1]} : vector<8x128xf32> to vector<8x32xf32>
    %62 = vector.extract_strided_slice %60 {offsets = [0, 32], sizes = [8, 32], strides = [1, 1]} : vector<8x128xf32> to vector<8x32xf32>
    %63 = vector.extract_strided_slice %60 {offsets = [0, 96], sizes = [8, 32], strides = [1, 1]} : vector<8x128xf32> to vector<8x32xf32>
    %64 = vector.extract_strided_slice %55 {offsets = [0, 64], sizes = [8, 32], strides = [1, 1]} : vector<8x128xf32> to vector<8x32xf32>
    %65 = math.tanh %64 : vector<8x32xf32>
    %66 = arith.mulf %62, %47 : vector<8x32xf32>
    %67 = arith.mulf %61, %65 : vector<8x32xf32>
    %68 = arith.addf %66, %67 : vector<8x32xf32>
    %69 = math.tanh %68 : vector<8x32xf32>
    %70 = arith.mulf %63, %69 : vector<8x32xf32>
    %71 = tpu.concatenate %70, %70 in 1 : vector<8x32xf32>, vector<8x32xf32> -> vector<8x64xf32>
    %72 = arith.mulf %71, %9 : vector<8x64xf32>
    %73 = vector.extract_strided_slice %25 {offsets = [16, 0], sizes = [8, 128], strides = [1, 1]} : vector<64x128xf32> to vector<8x128xf32>
    %74 = arith.addf %73, %26 : vector<8x128xf32>
    %cst_20 = arith.constant dense<0.000000e+00> : vector<8x128xf32>
    %75 = tpu.matmul %72, %22, %cst_20 {dimension_numbers = #tpu.dot_dimension_numbers<[1], [0], [0], [1], [0, 0, 1, 1], [], []>} : vector<8x64xf32>, vector<64x128xf32>, vector<8x128xf32> -> vector<8x128xf32>
    %76 = arith.addf %74, %75 : vector<8x128xf32>
    %77 = arith.negf %76 : vector<8x128xf32>
    %78 = math.exp %77 : vector<8x128xf32>
    %cst_21 = arith.constant 1.000000e+00 : f32
    %79 = vector.broadcast %cst_21 : f32 to vector<8x128xf32>
    %80 = arith.addf %79, %78 : vector<8x128xf32>
    %81 = arith.divf %79, %80 : vector<8x128xf32>
    %82 = vector.extract_strided_slice %81 {offsets = [0, 0], sizes = [8, 32], strides = [1, 1]} : vector<8x128xf32> to vector<8x32xf32>
    %83 = vector.extract_strided_slice %81 {offsets = [0, 32], sizes = [8, 32], strides = [1, 1]} : vector<8x128xf32> to vector<8x32xf32>
    %84 = vector.extract_strided_slice %81 {offsets = [0, 96], sizes = [8, 32], strides = [1, 1]} : vector<8x128xf32> to vector<8x32xf32>
    %85 = vector.extract_strided_slice %76 {offsets = [0, 64], sizes = [8, 32], strides = [1, 1]} : vector<8x128xf32> to vector<8x32xf32>
    %86 = math.tanh %85 : vector<8x32xf32>
    %87 = arith.mulf %83, %68 : vector<8x32xf32>
    %88 = arith.mulf %82, %86 : vector<8x32xf32>
    %89 = arith.addf %87, %88 : vector<8x32xf32>
    %90 = math.tanh %89 : vector<8x32xf32>
    %91 = arith.mulf %84, %90 : vector<8x32xf32>
    %92 = tpu.concatenate %91, %91 in 1 : vector<8x32xf32>, vector<8x32xf32> -> vector<8x64xf32>
    %93 = arith.mulf %92, %9 : vector<8x64xf32>
    %94 = vector.extract_strided_slice %25 {offsets = [24, 0], sizes = [8, 128], strides = [1, 1]} : vector<64x128xf32> to vector<8x128xf32>
    %95 = arith.addf %94, %26 : vector<8x128xf32>
    %cst_22 = arith.constant dense<0.000000e+00> : vector<8x128xf32>
    %96 = tpu.matmul %93, %22, %cst_22 {dimension_numbers = #tpu.dot_dimension_numbers<[1], [0], [0], [1], [0, 0, 1, 1], [], []>} : vector<8x64xf32>, vector<64x128xf32>, vector<8x128xf32> -> vector<8x128xf32>
    %97 = arith.addf %95, %96 : vector<8x128xf32>
    %98 = arith.negf %97 : vector<8x128xf32>
    %99 = math.exp %98 : vector<8x128xf32>
    %cst_23 = arith.constant 1.000000e+00 : f32
    %100 = vector.broadcast %cst_23 : f32 to vector<8x128xf32>
    %101 = arith.addf %100, %99 : vector<8x128xf32>
    %102 = arith.divf %100, %101 : vector<8x128xf32>
    %103 = vector.extract_strided_slice %102 {offsets = [0, 0], sizes = [8, 32], strides = [1, 1]} : vector<8x128xf32> to vector<8x32xf32>
    %104 = vector.extract_strided_slice %102 {offsets = [0, 32], sizes = [8, 32], strides = [1, 1]} : vector<8x128xf32> to vector<8x32xf32>
    %105 = vector.extract_strided_slice %102 {offsets = [0, 96], sizes = [8, 32], strides = [1, 1]} : vector<8x128xf32> to vector<8x32xf32>
    %106 = vector.extract_strided_slice %97 {offsets = [0, 64], sizes = [8, 32], strides = [1, 1]} : vector<8x128xf32> to vector<8x32xf32>
    %107 = math.tanh %106 : vector<8x32xf32>
    %108 = arith.mulf %104, %89 : vector<8x32xf32>
    %109 = arith.mulf %103, %107 : vector<8x32xf32>
    %110 = arith.addf %108, %109 : vector<8x32xf32>
    %111 = math.tanh %110 : vector<8x32xf32>
    %112 = arith.mulf %105, %111 : vector<8x32xf32>
    %113 = tpu.concatenate %112, %112 in 1 : vector<8x32xf32>, vector<8x32xf32> -> vector<8x64xf32>
    %114 = arith.mulf %113, %9 : vector<8x64xf32>
    %115 = vector.extract_strided_slice %25 {offsets = [32, 0], sizes = [8, 128], strides = [1, 1]} : vector<64x128xf32> to vector<8x128xf32>
    %116 = arith.addf %115, %26 : vector<8x128xf32>
    %cst_24 = arith.constant dense<0.000000e+00> : vector<8x128xf32>
    %117 = tpu.matmul %114, %22, %cst_24 {dimension_numbers = #tpu.dot_dimension_numbers<[1], [0], [0], [1], [0, 0, 1, 1], [], []>} : vector<8x64xf32>, vector<64x128xf32>, vector<8x128xf32> -> vector<8x128xf32>
    %118 = arith.addf %116, %117 : vector<8x128xf32>
    %119 = arith.negf %118 : vector<8x128xf32>
    %120 = math.exp %119 : vector<8x128xf32>
    %cst_25 = arith.constant 1.000000e+00 : f32
    %121 = vector.broadcast %cst_25 : f32 to vector<8x128xf32>
    %122 = arith.addf %121, %120 : vector<8x128xf32>
    %123 = arith.divf %121, %122 : vector<8x128xf32>
    %124 = vector.extract_strided_slice %123 {offsets = [0, 0], sizes = [8, 32], strides = [1, 1]} : vector<8x128xf32> to vector<8x32xf32>
    %125 = vector.extract_strided_slice %123 {offsets = [0, 32], sizes = [8, 32], strides = [1, 1]} : vector<8x128xf32> to vector<8x32xf32>
    %126 = vector.extract_strided_slice %123 {offsets = [0, 96], sizes = [8, 32], strides = [1, 1]} : vector<8x128xf32> to vector<8x32xf32>
    %127 = vector.extract_strided_slice %118 {offsets = [0, 64], sizes = [8, 32], strides = [1, 1]} : vector<8x128xf32> to vector<8x32xf32>
    %128 = math.tanh %127 : vector<8x32xf32>
    %129 = arith.mulf %125, %110 : vector<8x32xf32>
    %130 = arith.mulf %124, %128 : vector<8x32xf32>
    %131 = arith.addf %129, %130 : vector<8x32xf32>
    %132 = math.tanh %131 : vector<8x32xf32>
    %133 = arith.mulf %126, %132 : vector<8x32xf32>
    %134 = tpu.concatenate %133, %133 in 1 : vector<8x32xf32>, vector<8x32xf32> -> vector<8x64xf32>
    %135 = arith.mulf %134, %9 : vector<8x64xf32>
    %136 = vector.extract_strided_slice %25 {offsets = [40, 0], sizes = [8, 128], strides = [1, 1]} : vector<64x128xf32> to vector<8x128xf32>
    %137 = arith.addf %136, %26 : vector<8x128xf32>
    %cst_26 = arith.constant dense<0.000000e+00> : vector<8x128xf32>
    %138 = tpu.matmul %135, %22, %cst_26 {dimension_numbers = #tpu.dot_dimension_numbers<[1], [0], [0], [1], [0, 0, 1, 1], [], []>} : vector<8x64xf32>, vector<64x128xf32>, vector<8x128xf32> -> vector<8x128xf32>
    %139 = arith.addf %137, %138 : vector<8x128xf32>
    %140 = arith.negf %139 : vector<8x128xf32>
    %141 = math.exp %140 : vector<8x128xf32>
    %cst_27 = arith.constant 1.000000e+00 : f32
    %142 = vector.broadcast %cst_27 : f32 to vector<8x128xf32>
    %143 = arith.addf %142, %141 : vector<8x128xf32>
    %144 = arith.divf %142, %143 : vector<8x128xf32>
    %145 = vector.extract_strided_slice %144 {offsets = [0, 0], sizes = [8, 32], strides = [1, 1]} : vector<8x128xf32> to vector<8x32xf32>
    %146 = vector.extract_strided_slice %144 {offsets = [0, 32], sizes = [8, 32], strides = [1, 1]} : vector<8x128xf32> to vector<8x32xf32>
    %147 = vector.extract_strided_slice %144 {offsets = [0, 96], sizes = [8, 32], strides = [1, 1]} : vector<8x128xf32> to vector<8x32xf32>
    %148 = vector.extract_strided_slice %139 {offsets = [0, 64], sizes = [8, 32], strides = [1, 1]} : vector<8x128xf32> to vector<8x32xf32>
    %149 = math.tanh %148 : vector<8x32xf32>
    %150 = arith.mulf %146, %131 : vector<8x32xf32>
    %151 = arith.mulf %145, %149 : vector<8x32xf32>
    %152 = arith.addf %150, %151 : vector<8x32xf32>
    %153 = math.tanh %152 : vector<8x32xf32>
    %154 = arith.mulf %147, %153 : vector<8x32xf32>
    %155 = tpu.concatenate %154, %154 in 1 : vector<8x32xf32>, vector<8x32xf32> -> vector<8x64xf32>
    %156 = arith.mulf %155, %9 : vector<8x64xf32>
    %157 = vector.extract_strided_slice %25 {offsets = [48, 0], sizes = [8, 128], strides = [1, 1]} : vector<64x128xf32> to vector<8x128xf32>
    %158 = arith.addf %157, %26 : vector<8x128xf32>
    %cst_28 = arith.constant dense<0.000000e+00> : vector<8x128xf32>
    %159 = tpu.matmul %156, %22, %cst_28 {dimension_numbers = #tpu.dot_dimension_numbers<[1], [0], [0], [1], [0, 0, 1, 1], [], []>} : vector<8x64xf32>, vector<64x128xf32>, vector<8x128xf32> -> vector<8x128xf32>
    %160 = arith.addf %158, %159 : vector<8x128xf32>
    %161 = arith.negf %160 : vector<8x128xf32>
    %162 = math.exp %161 : vector<8x128xf32>
    %cst_29 = arith.constant 1.000000e+00 : f32
    %163 = vector.broadcast %cst_29 : f32 to vector<8x128xf32>
    %164 = arith.addf %163, %162 : vector<8x128xf32>
    %165 = arith.divf %163, %164 : vector<8x128xf32>
    %166 = vector.extract_strided_slice %165 {offsets = [0, 0], sizes = [8, 32], strides = [1, 1]} : vector<8x128xf32> to vector<8x32xf32>
    %167 = vector.extract_strided_slice %165 {offsets = [0, 32], sizes = [8, 32], strides = [1, 1]} : vector<8x128xf32> to vector<8x32xf32>
    %168 = vector.extract_strided_slice %165 {offsets = [0, 96], sizes = [8, 32], strides = [1, 1]} : vector<8x128xf32> to vector<8x32xf32>
    %169 = vector.extract_strided_slice %160 {offsets = [0, 64], sizes = [8, 32], strides = [1, 1]} : vector<8x128xf32> to vector<8x32xf32>
    %170 = math.tanh %169 : vector<8x32xf32>
    %171 = arith.mulf %167, %152 : vector<8x32xf32>
    %172 = arith.mulf %166, %170 : vector<8x32xf32>
    %173 = arith.addf %171, %172 : vector<8x32xf32>
    %174 = math.tanh %173 : vector<8x32xf32>
    %175 = arith.mulf %168, %174 : vector<8x32xf32>
    %176 = tpu.concatenate %175, %175 in 1 : vector<8x32xf32>, vector<8x32xf32> -> vector<8x64xf32>
    %177 = arith.mulf %176, %9 : vector<8x64xf32>
    %178 = vector.extract_strided_slice %25 {offsets = [56, 0], sizes = [8, 128], strides = [1, 1]} : vector<64x128xf32> to vector<8x128xf32>
    %179 = arith.addf %178, %26 : vector<8x128xf32>
    %cst_30 = arith.constant dense<0.000000e+00> : vector<8x128xf32>
    %180 = tpu.matmul %177, %22, %cst_30 {dimension_numbers = #tpu.dot_dimension_numbers<[1], [0], [0], [1], [0, 0, 1, 1], [], []>} : vector<8x64xf32>, vector<64x128xf32>, vector<8x128xf32> -> vector<8x128xf32>
    %181 = arith.addf %179, %180 : vector<8x128xf32>
    %182 = arith.negf %181 : vector<8x128xf32>
    %183 = math.exp %182 : vector<8x128xf32>
    %cst_31 = arith.constant 1.000000e+00 : f32
    %184 = vector.broadcast %cst_31 : f32 to vector<8x128xf32>
    %185 = arith.addf %184, %183 : vector<8x128xf32>
    %186 = arith.divf %184, %185 : vector<8x128xf32>
    %187 = vector.extract_strided_slice %186 {offsets = [0, 0], sizes = [8, 32], strides = [1, 1]} : vector<8x128xf32> to vector<8x32xf32>
    %188 = vector.extract_strided_slice %186 {offsets = [0, 32], sizes = [8, 32], strides = [1, 1]} : vector<8x128xf32> to vector<8x32xf32>
    %189 = vector.extract_strided_slice %186 {offsets = [0, 96], sizes = [8, 32], strides = [1, 1]} : vector<8x128xf32> to vector<8x32xf32>
    %190 = vector.extract_strided_slice %181 {offsets = [0, 64], sizes = [8, 32], strides = [1, 1]} : vector<8x128xf32> to vector<8x32xf32>
    %191 = math.tanh %190 : vector<8x32xf32>
    %192 = arith.mulf %188, %173 : vector<8x32xf32>
    %193 = arith.mulf %187, %191 : vector<8x32xf32>
    %194 = arith.addf %192, %193 : vector<8x32xf32>
    %195 = math.tanh %194 : vector<8x32xf32>
    %196 = arith.mulf %189, %195 : vector<8x32xf32>
    %197 = vector.extract_strided_slice %49 {offsets = [4, 0], sizes = [4, 32], strides = [1, 1]} : vector<8x32xf32> to vector<4x32xf32>
    %198 = vector.extract_strided_slice %49 {offsets = [0, 0], sizes = [4, 32], strides = [1, 1]} : vector<8x32xf32> to vector<4x32xf32>
    %199 = tpu.concatenate %197, %198 in 0 : vector<4x32xf32>, vector<4x32xf32> -> vector<8x32xf32>
    %200 = vector.extract_strided_slice %70 {offsets = [4, 0], sizes = [4, 32], strides = [1, 1]} : vector<8x32xf32> to vector<4x32xf32>
    %201 = vector.extract_strided_slice %70 {offsets = [0, 0], sizes = [4, 32], strides = [1, 1]} : vector<8x32xf32> to vector<4x32xf32>
    %202 = tpu.concatenate %200, %201 in 0 : vector<4x32xf32>, vector<4x32xf32> -> vector<8x32xf32>
    %203 = vector.extract_strided_slice %91 {offsets = [4, 0], sizes = [4, 32], strides = [1, 1]} : vector<8x32xf32> to vector<4x32xf32>
    %204 = vector.extract_strided_slice %91 {offsets = [0, 0], sizes = [4, 32], strides = [1, 1]} : vector<8x32xf32> to vector<4x32xf32>
    %205 = tpu.concatenate %203, %204 in 0 : vector<4x32xf32>, vector<4x32xf32> -> vector<8x32xf32>
    %206 = vector.extract_strided_slice %112 {offsets = [4, 0], sizes = [4, 32], strides = [1, 1]} : vector<8x32xf32> to vector<4x32xf32>
    %207 = vector.extract_strided_slice %112 {offsets = [0, 0], sizes = [4, 32], strides = [1, 1]} : vector<8x32xf32> to vector<4x32xf32>
    %208 = tpu.concatenate %206, %207 in 0 : vector<4x32xf32>, vector<4x32xf32> -> vector<8x32xf32>
    %209 = vector.extract_strided_slice %133 {offsets = [4, 0], sizes = [4, 32], strides = [1, 1]} : vector<8x32xf32> to vector<4x32xf32>
    %210 = vector.extract_strided_slice %133 {offsets = [0, 0], sizes = [4, 32], strides = [1, 1]} : vector<8x32xf32> to vector<4x32xf32>
    %211 = tpu.concatenate %209, %210 in 0 : vector<4x32xf32>, vector<4x32xf32> -> vector<8x32xf32>
    %212 = vector.extract_strided_slice %154 {offsets = [4, 0], sizes = [4, 32], strides = [1, 1]} : vector<8x32xf32> to vector<4x32xf32>
    %213 = vector.extract_strided_slice %154 {offsets = [0, 0], sizes = [4, 32], strides = [1, 1]} : vector<8x32xf32> to vector<4x32xf32>
    %214 = tpu.concatenate %212, %213 in 0 : vector<4x32xf32>, vector<4x32xf32> -> vector<8x32xf32>
    %215 = vector.extract_strided_slice %175 {offsets = [4, 0], sizes = [4, 32], strides = [1, 1]} : vector<8x32xf32> to vector<4x32xf32>
    %216 = vector.extract_strided_slice %175 {offsets = [0, 0], sizes = [4, 32], strides = [1, 1]} : vector<8x32xf32> to vector<4x32xf32>
    %217 = tpu.concatenate %215, %216 in 0 : vector<4x32xf32>, vector<4x32xf32> -> vector<8x32xf32>
    %218 = vector.extract_strided_slice %196 {offsets = [4, 0], sizes = [4, 32], strides = [1, 1]} : vector<8x32xf32> to vector<4x32xf32>
    %219 = vector.extract_strided_slice %196 {offsets = [0, 0], sizes = [4, 32], strides = [1, 1]} : vector<8x32xf32> to vector<4x32xf32>
    %220 = tpu.concatenate %218, %219 in 0 : vector<4x32xf32>, vector<4x32xf32> -> vector<8x32xf32>
    %221 = tpu.concatenate %49, %220, %220, %49 in 1 : vector<8x32xf32>, vector<8x32xf32>, vector<8x32xf32>, vector<8x32xf32> -> vector<8x128xf32>
    %222 = arith.mulf %221, %19 : vector<8x128xf32>
    %223 = tpu.concatenate %70, %217, %217, %70 in 1 : vector<8x32xf32>, vector<8x32xf32>, vector<8x32xf32>, vector<8x32xf32> -> vector<8x128xf32>
    %224 = arith.mulf %223, %19 : vector<8x128xf32>
    %225 = tpu.concatenate %91, %214, %214, %91 in 1 : vector<8x32xf32>, vector<8x32xf32>, vector<8x32xf32>, vector<8x32xf32> -> vector<8x128xf32>
    %226 = arith.mulf %225, %19 : vector<8x128xf32>
    %227 = tpu.concatenate %112, %211, %211, %112 in 1 : vector<8x32xf32>, vector<8x32xf32>, vector<8x32xf32>, vector<8x32xf32> -> vector<8x128xf32>
    %228 = arith.mulf %227, %19 : vector<8x128xf32>
    %229 = tpu.concatenate %133, %208, %208, %133 in 1 : vector<8x32xf32>, vector<8x32xf32>, vector<8x32xf32>, vector<8x32xf32> -> vector<8x128xf32>
    %230 = arith.mulf %229, %19 : vector<8x128xf32>
    %231 = tpu.concatenate %154, %205, %205, %154 in 1 : vector<8x32xf32>, vector<8x32xf32>, vector<8x32xf32>, vector<8x32xf32> -> vector<8x128xf32>
    %232 = arith.mulf %231, %19 : vector<8x128xf32>
    %233 = tpu.concatenate %175, %202, %202, %175 in 1 : vector<8x32xf32>, vector<8x32xf32>, vector<8x32xf32>, vector<8x32xf32> -> vector<8x128xf32>
    %234 = arith.mulf %233, %19 : vector<8x128xf32>
    %235 = tpu.concatenate %196, %199, %199, %196 in 1 : vector<8x32xf32>, vector<8x32xf32>, vector<8x32xf32>, vector<8x32xf32> -> vector<8x128xf32>
    %236 = arith.mulf %235, %19 : vector<8x128xf32>
    %237 = tpu.concatenate %222, %224, %226, %228, %230, %232, %234, %236 in 0 : vector<8x128xf32>, vector<8x128xf32>, vector<8x128xf32>, vector<8x128xf32>, vector<8x128xf32>, vector<8x128xf32>, vector<8x128xf32>, vector<8x128xf32> -> vector<64x128xf32>
    %cst_32 = arith.constant dense<0.000000e+00> : vector<64x128xf32>
    %238 = tpu.matmul %237, %23, %cst_32 {dimension_numbers = #tpu.dot_dimension_numbers<[1], [0], [0], [1], [0, 0, 1, 1], [], []>} : vector<64x128xf32>, vector<128x128xf32>, vector<64x128xf32> -> vector<64x128xf32>
    %c0_33 = arith.constant 0 : index
    %c0_34 = arith.constant 0 : index
    %239 = vector.load %arg5[%c0_33, %c0_34] : memref<8x128xf32, #tpu.memory_space<vmem>>, vector<8x128xf32>
    %cst_35 = arith.constant 0.000000e+00 : f32
    %240 = vector.broadcast %cst_35 : f32 to vector<8x32xf32>
    %cst_36 = arith.constant 0.000000e+00 : f32
    %241 = vector.broadcast %cst_36 : f32 to vector<8x32xf32>
    %242 = vector.extract_strided_slice %238 {offsets = [0, 0], sizes = [8, 128], strides = [1, 1]} : vector<64x128xf32> to vector<8x128xf32>
    %243 = arith.addf %242, %239 : vector<8x128xf32>
    %cst_37 = arith.constant dense<0.000000e+00> : vector<8x128xf32>
    %244 = tpu.matmul %240, %24, %cst_37 {dimension_numbers = #tpu.dot_dimension_numbers<[1], [0], [0], [1], [0, 0, 1, 1], [], []>} : vector<8x32xf32>, vector<32x128xf32>, vector<8x128xf32> -> vector<8x128xf32>
    %245 = arith.addf %243, %244 : vector<8x128xf32>
    %246 = arith.negf %245 : vector<8x128xf32>
    %247 = math.exp %246 : vector<8x128xf32>
    %cst_38 = arith.constant 1.000000e+00 : f32
    %248 = vector.broadcast %cst_38 : f32 to vector<8x128xf32>
    %249 = arith.addf %248, %247 : vector<8x128xf32>
    %250 = arith.divf %248, %249 : vector<8x128xf32>
    %251 = vector.extract_strided_slice %250 {offsets = [0, 0], sizes = [8, 32], strides = [1, 1]} : vector<8x128xf32> to vector<8x32xf32>
    %252 = vector.extract_strided_slice %250 {offsets = [0, 32], sizes = [8, 32], strides = [1, 1]} : vector<8x128xf32> to vector<8x32xf32>
    %253 = vector.extract_strided_slice %250 {offsets = [0, 96], sizes = [8, 32], strides = [1, 1]} : vector<8x128xf32> to vector<8x32xf32>
    %254 = vector.extract_strided_slice %245 {offsets = [0, 64], sizes = [8, 32], strides = [1, 1]} : vector<8x128xf32> to vector<8x32xf32>
    %255 = math.tanh %254 : vector<8x32xf32>
    %256 = arith.mulf %252, %241 : vector<8x32xf32>
    %257 = arith.mulf %251, %255 : vector<8x32xf32>
    %258 = arith.addf %256, %257 : vector<8x32xf32>
    %259 = math.tanh %258 : vector<8x32xf32>
    %260 = arith.mulf %253, %259 : vector<8x32xf32>
    %261 = vector.extract_strided_slice %260 {offsets = [4, 0], sizes = [4, 32], strides = [1, 1]} : vector<8x32xf32> to vector<4x32xf32>
    %262 = vector.extract_strided_slice %238 {offsets = [8, 0], sizes = [8, 128], strides = [1, 1]} : vector<64x128xf32> to vector<8x128xf32>
    %263 = arith.addf %262, %239 : vector<8x128xf32>
    %cst_39 = arith.constant dense<0.000000e+00> : vector<8x128xf32>
    %264 = tpu.matmul %260, %24, %cst_39 {dimension_numbers = #tpu.dot_dimension_numbers<[1], [0], [0], [1], [0, 0, 1, 1], [], []>} : vector<8x32xf32>, vector<32x128xf32>, vector<8x128xf32> -> vector<8x128xf32>
    %265 = arith.addf %263, %264 : vector<8x128xf32>
    %266 = arith.negf %265 : vector<8x128xf32>
    %267 = math.exp %266 : vector<8x128xf32>
    %cst_40 = arith.constant 1.000000e+00 : f32
    %268 = vector.broadcast %cst_40 : f32 to vector<8x128xf32>
    %269 = arith.addf %268, %267 : vector<8x128xf32>
    %270 = arith.divf %268, %269 : vector<8x128xf32>
    %271 = vector.extract_strided_slice %270 {offsets = [0, 0], sizes = [8, 32], strides = [1, 1]} : vector<8x128xf32> to vector<8x32xf32>
    %272 = vector.extract_strided_slice %270 {offsets = [0, 32], sizes = [8, 32], strides = [1, 1]} : vector<8x128xf32> to vector<8x32xf32>
    %273 = vector.extract_strided_slice %270 {offsets = [0, 96], sizes = [8, 32], strides = [1, 1]} : vector<8x128xf32> to vector<8x32xf32>
    %274 = vector.extract_strided_slice %265 {offsets = [0, 64], sizes = [8, 32], strides = [1, 1]} : vector<8x128xf32> to vector<8x32xf32>
    %275 = math.tanh %274 : vector<8x32xf32>
    %276 = arith.mulf %272, %258 : vector<8x32xf32>
    %277 = arith.mulf %271, %275 : vector<8x32xf32>
    %278 = arith.addf %276, %277 : vector<8x32xf32>
    %279 = math.tanh %278 : vector<8x32xf32>
    %280 = arith.mulf %273, %279 : vector<8x32xf32>
    %281 = vector.extract_strided_slice %238 {offsets = [16, 0], sizes = [8, 128], strides = [1, 1]} : vector<64x128xf32> to vector<8x128xf32>
    %282 = arith.addf %281, %239 : vector<8x128xf32>
    %cst_41 = arith.constant dense<0.000000e+00> : vector<8x128xf32>
    %283 = tpu.matmul %280, %24, %cst_41 {dimension_numbers = #tpu.dot_dimension_numbers<[1], [0], [0], [1], [0, 0, 1, 1], [], []>} : vector<8x32xf32>, vector<32x128xf32>, vector<8x128xf32> -> vector<8x128xf32>
    %284 = arith.addf %282, %283 : vector<8x128xf32>
    %285 = arith.negf %284 : vector<8x128xf32>
    %286 = math.exp %285 : vector<8x128xf32>
    %cst_42 = arith.constant 1.000000e+00 : f32
    %287 = vector.broadcast %cst_42 : f32 to vector<8x128xf32>
    %288 = arith.addf %287, %286 : vector<8x128xf32>
    %289 = arith.divf %287, %288 : vector<8x128xf32>
    %290 = vector.extract_strided_slice %289 {offsets = [0, 0], sizes = [8, 32], strides = [1, 1]} : vector<8x128xf32> to vector<8x32xf32>
    %291 = vector.extract_strided_slice %289 {offsets = [0, 32], sizes = [8, 32], strides = [1, 1]} : vector<8x128xf32> to vector<8x32xf32>
    %292 = vector.extract_strided_slice %289 {offsets = [0, 96], sizes = [8, 32], strides = [1, 1]} : vector<8x128xf32> to vector<8x32xf32>
    %293 = vector.extract_strided_slice %284 {offsets = [0, 64], sizes = [8, 32], strides = [1, 1]} : vector<8x128xf32> to vector<8x32xf32>
    %294 = math.tanh %293 : vector<8x32xf32>
    %295 = arith.mulf %291, %278 : vector<8x32xf32>
    %296 = arith.mulf %290, %294 : vector<8x32xf32>
    %297 = arith.addf %295, %296 : vector<8x32xf32>
    %298 = math.tanh %297 : vector<8x32xf32>
    %299 = arith.mulf %292, %298 : vector<8x32xf32>
    %300 = vector.extract_strided_slice %238 {offsets = [24, 0], sizes = [8, 128], strides = [1, 1]} : vector<64x128xf32> to vector<8x128xf32>
    %301 = arith.addf %300, %239 : vector<8x128xf32>
    %cst_43 = arith.constant dense<0.000000e+00> : vector<8x128xf32>
    %302 = tpu.matmul %299, %24, %cst_43 {dimension_numbers = #tpu.dot_dimension_numbers<[1], [0], [0], [1], [0, 0, 1, 1], [], []>} : vector<8x32xf32>, vector<32x128xf32>, vector<8x128xf32> -> vector<8x128xf32>
    %303 = arith.addf %301, %302 : vector<8x128xf32>
    %304 = arith.negf %303 : vector<8x128xf32>
    %305 = math.exp %304 : vector<8x128xf32>
    %cst_44 = arith.constant 1.000000e+00 : f32
    %306 = vector.broadcast %cst_44 : f32 to vector<8x128xf32>
    %307 = arith.addf %306, %305 : vector<8x128xf32>
    %308 = arith.divf %306, %307 : vector<8x128xf32>
    %309 = vector.extract_strided_slice %308 {offsets = [0, 0], sizes = [8, 32], strides = [1, 1]} : vector<8x128xf32> to vector<8x32xf32>
    %310 = vector.extract_strided_slice %308 {offsets = [0, 32], sizes = [8, 32], strides = [1, 1]} : vector<8x128xf32> to vector<8x32xf32>
    %311 = vector.extract_strided_slice %308 {offsets = [0, 96], sizes = [8, 32], strides = [1, 1]} : vector<8x128xf32> to vector<8x32xf32>
    %312 = vector.extract_strided_slice %303 {offsets = [0, 64], sizes = [8, 32], strides = [1, 1]} : vector<8x128xf32> to vector<8x32xf32>
    %313 = math.tanh %312 : vector<8x32xf32>
    %314 = arith.mulf %310, %297 : vector<8x32xf32>
    %315 = arith.mulf %309, %313 : vector<8x32xf32>
    %316 = arith.addf %314, %315 : vector<8x32xf32>
    %317 = math.tanh %316 : vector<8x32xf32>
    %318 = arith.mulf %311, %317 : vector<8x32xf32>
    %319 = vector.extract_strided_slice %238 {offsets = [32, 0], sizes = [8, 128], strides = [1, 1]} : vector<64x128xf32> to vector<8x128xf32>
    %320 = arith.addf %319, %239 : vector<8x128xf32>
    %cst_45 = arith.constant dense<0.000000e+00> : vector<8x128xf32>
    %321 = tpu.matmul %318, %24, %cst_45 {dimension_numbers = #tpu.dot_dimension_numbers<[1], [0], [0], [1], [0, 0, 1, 1], [], []>} : vector<8x32xf32>, vector<32x128xf32>, vector<8x128xf32> -> vector<8x128xf32>
    %322 = arith.addf %320, %321 : vector<8x128xf32>
    %323 = arith.negf %322 : vector<8x128xf32>
    %324 = math.exp %323 : vector<8x128xf32>
    %cst_46 = arith.constant 1.000000e+00 : f32
    %325 = vector.broadcast %cst_46 : f32 to vector<8x128xf32>
    %326 = arith.addf %325, %324 : vector<8x128xf32>
    %327 = arith.divf %325, %326 : vector<8x128xf32>
    %328 = vector.extract_strided_slice %327 {offsets = [0, 0], sizes = [8, 32], strides = [1, 1]} : vector<8x128xf32> to vector<8x32xf32>
    %329 = vector.extract_strided_slice %327 {offsets = [0, 32], sizes = [8, 32], strides = [1, 1]} : vector<8x128xf32> to vector<8x32xf32>
    %330 = vector.extract_strided_slice %327 {offsets = [0, 96], sizes = [8, 32], strides = [1, 1]} : vector<8x128xf32> to vector<8x32xf32>
    %331 = vector.extract_strided_slice %322 {offsets = [0, 64], sizes = [8, 32], strides = [1, 1]} : vector<8x128xf32> to vector<8x32xf32>
    %332 = math.tanh %331 : vector<8x32xf32>
    %333 = arith.mulf %329, %316 : vector<8x32xf32>
    %334 = arith.mulf %328, %332 : vector<8x32xf32>
    %335 = arith.addf %333, %334 : vector<8x32xf32>
    %336 = math.tanh %335 : vector<8x32xf32>
    %337 = arith.mulf %330, %336 : vector<8x32xf32>
    %338 = vector.extract_strided_slice %238 {offsets = [40, 0], sizes = [8, 128], strides = [1, 1]} : vector<64x128xf32> to vector<8x128xf32>
    %339 = arith.addf %338, %239 : vector<8x128xf32>
    %cst_47 = arith.constant dense<0.000000e+00> : vector<8x128xf32>
    %340 = tpu.matmul %337, %24, %cst_47 {dimension_numbers = #tpu.dot_dimension_numbers<[1], [0], [0], [1], [0, 0, 1, 1], [], []>} : vector<8x32xf32>, vector<32x128xf32>, vector<8x128xf32> -> vector<8x128xf32>
    %341 = arith.addf %339, %340 : vector<8x128xf32>
    %342 = arith.negf %341 : vector<8x128xf32>
    %343 = math.exp %342 : vector<8x128xf32>
    %cst_48 = arith.constant 1.000000e+00 : f32
    %344 = vector.broadcast %cst_48 : f32 to vector<8x128xf32>
    %345 = arith.addf %344, %343 : vector<8x128xf32>
    %346 = arith.divf %344, %345 : vector<8x128xf32>
    %347 = vector.extract_strided_slice %346 {offsets = [0, 0], sizes = [8, 32], strides = [1, 1]} : vector<8x128xf32> to vector<8x32xf32>
    %348 = vector.extract_strided_slice %346 {offsets = [0, 32], sizes = [8, 32], strides = [1, 1]} : vector<8x128xf32> to vector<8x32xf32>
    %349 = vector.extract_strided_slice %346 {offsets = [0, 96], sizes = [8, 32], strides = [1, 1]} : vector<8x128xf32> to vector<8x32xf32>
    %350 = vector.extract_strided_slice %341 {offsets = [0, 64], sizes = [8, 32], strides = [1, 1]} : vector<8x128xf32> to vector<8x32xf32>
    %351 = math.tanh %350 : vector<8x32xf32>
    %352 = arith.mulf %348, %335 : vector<8x32xf32>
    %353 = arith.mulf %347, %351 : vector<8x32xf32>
    %354 = arith.addf %352, %353 : vector<8x32xf32>
    %355 = math.tanh %354 : vector<8x32xf32>
    %356 = arith.mulf %349, %355 : vector<8x32xf32>
    %357 = vector.extract_strided_slice %238 {offsets = [48, 0], sizes = [8, 128], strides = [1, 1]} : vector<64x128xf32> to vector<8x128xf32>
    %358 = arith.addf %357, %239 : vector<8x128xf32>
    %cst_49 = arith.constant dense<0.000000e+00> : vector<8x128xf32>
    %359 = tpu.matmul %356, %24, %cst_49 {dimension_numbers = #tpu.dot_dimension_numbers<[1], [0], [0], [1], [0, 0, 1, 1], [], []>} : vector<8x32xf32>, vector<32x128xf32>, vector<8x128xf32> -> vector<8x128xf32>
    %360 = arith.addf %358, %359 : vector<8x128xf32>
    %361 = arith.negf %360 : vector<8x128xf32>
    %362 = math.exp %361 : vector<8x128xf32>
    %cst_50 = arith.constant 1.000000e+00 : f32
    %363 = vector.broadcast %cst_50 : f32 to vector<8x128xf32>
    %364 = arith.addf %363, %362 : vector<8x128xf32>
    %365 = arith.divf %363, %364 : vector<8x128xf32>
    %366 = vector.extract_strided_slice %365 {offsets = [0, 0], sizes = [8, 32], strides = [1, 1]} : vector<8x128xf32> to vector<8x32xf32>
    %367 = vector.extract_strided_slice %365 {offsets = [0, 32], sizes = [8, 32], strides = [1, 1]} : vector<8x128xf32> to vector<8x32xf32>
    %368 = vector.extract_strided_slice %365 {offsets = [0, 96], sizes = [8, 32], strides = [1, 1]} : vector<8x128xf32> to vector<8x32xf32>
    %369 = vector.extract_strided_slice %360 {offsets = [0, 64], sizes = [8, 32], strides = [1, 1]} : vector<8x128xf32> to vector<8x32xf32>
    %370 = math.tanh %369 : vector<8x32xf32>
    %371 = arith.mulf %367, %354 : vector<8x32xf32>
    %372 = arith.mulf %366, %370 : vector<8x32xf32>
    %373 = arith.addf %371, %372 : vector<8x32xf32>
    %374 = math.tanh %373 : vector<8x32xf32>
    %375 = arith.mulf %368, %374 : vector<8x32xf32>
    %376 = vector.extract_strided_slice %238 {offsets = [56, 0], sizes = [8, 128], strides = [1, 1]} : vector<64x128xf32> to vector<8x128xf32>
    %377 = arith.addf %376, %239 : vector<8x128xf32>
    %cst_51 = arith.constant dense<0.000000e+00> : vector<8x128xf32>
    %378 = tpu.matmul %375, %24, %cst_51 {dimension_numbers = #tpu.dot_dimension_numbers<[1], [0], [0], [1], [0, 0, 1, 1], [], []>} : vector<8x32xf32>, vector<32x128xf32>, vector<8x128xf32> -> vector<8x128xf32>
    %379 = arith.addf %377, %378 : vector<8x128xf32>
    %380 = arith.negf %379 : vector<8x128xf32>
    %381 = math.exp %380 : vector<8x128xf32>
    %cst_52 = arith.constant 1.000000e+00 : f32
    %382 = vector.broadcast %cst_52 : f32 to vector<8x128xf32>
    %383 = arith.addf %382, %381 : vector<8x128xf32>
    %384 = arith.divf %382, %383 : vector<8x128xf32>
    %385 = vector.extract_strided_slice %384 {offsets = [0, 0], sizes = [8, 32], strides = [1, 1]} : vector<8x128xf32> to vector<8x32xf32>
    %386 = vector.extract_strided_slice %384 {offsets = [0, 32], sizes = [8, 32], strides = [1, 1]} : vector<8x128xf32> to vector<8x32xf32>
    %387 = vector.extract_strided_slice %384 {offsets = [0, 96], sizes = [8, 32], strides = [1, 1]} : vector<8x128xf32> to vector<8x32xf32>
    %388 = vector.extract_strided_slice %379 {offsets = [0, 64], sizes = [8, 32], strides = [1, 1]} : vector<8x128xf32> to vector<8x32xf32>
    %389 = math.tanh %388 : vector<8x32xf32>
    %390 = arith.mulf %386, %373 : vector<8x32xf32>
    %391 = arith.mulf %385, %389 : vector<8x32xf32>
    %392 = arith.addf %390, %391 : vector<8x32xf32>
    %393 = math.tanh %392 : vector<8x32xf32>
    %394 = arith.mulf %387, %393 : vector<8x32xf32>
    %395 = vector.extract_strided_slice %394 {offsets = [0, 0], sizes = [4, 32], strides = [1, 1]} : vector<8x32xf32> to vector<4x32xf32>
    %396 = tpu.concatenate %395, %261 in 1 : vector<4x32xf32>, vector<4x32xf32> -> vector<4x64xf32>
    %c0_53 = arith.constant 0 : index
    %c0_54 = arith.constant 0 : index
    %397 = vector.load %arg7[%c0_53, %c0_54] : memref<1x64xf32, #tpu.memory_space<vmem>>, vector<1x64xf32>
    %398 = vector.broadcast %397 : vector<1x64xf32> to vector<4x64xf32>
    %399 = arith.mulf %396, %398 : vector<4x64xf32>
    %cst_55 = arith.constant dense<0.000000e+00> : vector<4xf32>
    %400 = vector.multi_reduction <add>, %399, %cst_55 [1] : vector<4x64xf32> to vector<4xf32>
    %401 = vector.shape_cast %400 : vector<4xf32> to vector<4x1xf32>
    %c0_56 = arith.constant 0 : index
    %c0_57 = arith.constant 0 : index
    %402 = vector.load %arg8[%c0_56, %c0_57] : memref<1x1xf32, #tpu.memory_space<vmem>>, vector<1x1xf32>
    %403 = vector.broadcast %402 : vector<1x1xf32> to vector<4x1xf32>
    %404 = arith.addf %401, %403 : vector<4x1xf32>
    %405 = arith.negf %404 : vector<4x1xf32>
    %406 = math.exp %405 : vector<4x1xf32>
    %cst_58 = arith.constant 1.000000e+00 : f32
    %407 = vector.broadcast %cst_58 : f32 to vector<4x1xf32>
    %408 = arith.addf %407, %406 : vector<4x1xf32>
    %409 = arith.divf %407, %408 : vector<4x1xf32>
    %c0_59 = arith.constant 0 : index
    %c0_60 = arith.constant 0 : index
    %410 = vector.load %arg9[%c0_59, %c0_60] : memref<4x1xf32, #tpu.memory_space<vmem>>, vector<4x1xf32>
    tpu.vector_store %arg9[%c0_59, %c0_60], %409 {strides = array<i32>} : memref<4x1xf32, #tpu.memory_space<vmem>>, vector<4x1xf32>,
    return
  }
}

</mosaic_0001>

<bundles_post_ra>
// kernel: bilstm_forward.1
= control target key start
LH: loop header
LB: loop body
LE: loop exit
PB: predicated region body
PF: predicated region fallthrough
CT: control target
= control target key end

     0   :  { %vm115_vm0 = vcmask 1045504   ;;  %v2792_v0 = vmov 0.0   ;;  %vm2793_vm1 = vmmov 0   ;;  %v34_v4 = vlaneseq  ;;  %s2795_s18 = smov 64   ;;  %s3549_s1 = inlined_call_operand.vmem [shape: f32[38,128], index: 1, kind: input, shape index: {}]   ;;  %s3550_s3 = inlined_call_operand.vmem [shape: f32[64,128], index: 3, kind: input, shape index: {}]   ;;  %s3551_s0 = inlined_call_operand.vmem [shape: f32[64,38], index: 0, kind: input, shape index: {}]   ;;  %s3552_s2 = inlined_call_operand.vmem [shape: f32[8,128], index: 2, kind: input, shape index: {}]   ;;  %s3553_s4 = inlined_call_operand.vmem [shape: f32[128,128], index: 4, kind: input, shape index: {}]   ;;  %s3554_s6 = inlined_call_operand.vmem [shape: f32[32,128], index: 6, kind: input, shape index: {}]   ;;  %s3555_s5 = inlined_call_operand.vmem [shape: f32[8,128], index: 5, kind: input, shape index: {}]   ;;  %s3556_s8 = inlined_call_operand.<no memory space> [shape: f32[1,1], index: 8, kind: input, shape index: {}]   ;;  %s3557_s7 = inlined_call_operand.vmem [shape: f32[1,64], index: 7, kind: input, shape index: {}]   ;;  %s3558_s9 = inlined_call_operand.vmem [shape: f32[4,1], index: 9, kind: output, shape index: {}]  }
   0x1   :  { %2370 = vmatprep.subr.mxu1 %v2792_v0  ;;  %v61_v1 = vld [vmem:[%s3549_s1 + $0x20] sm:$0x3f]  ;;  %v2855_v2 = vld [vmem:[%s3550_s3 + $0x38] sm:$0xff]  ;;  %2386 = vmatprep.mubr.msk.f32.mxu1 %vm2793_vm1, %v2792_v0  ;;  %v2866_v5 = vld [vmem:[%s3550_s3 + $0x30] sm:$0xff]  ;;  %vm90_vm5 = vcmask 310272   ;;  %vm2794_vm6 = vmmov 1  }
   0x2   :  { %v60_v3 = vld [vmem:[%s3549_s1 + $0x18] sm:$0xff]  ;;  %2348 = vmatprep.subr.msk.mxu0 %vm115_vm0, %v61_v1  ;;  %2371 = vmatpush3.msra.mxu1 %v2855_v2  ;;  %v59_v6 = vld [vmem:[%s3549_s1 + $0x10] sm:$0xff]  ;;  %v2875_v7 = vld [vmem:[%s3550_s3 + $0x28] sm:$0xff]  ;;  %v2877_v8 = vshrl.u32 %v34_v4, 7  ;;  %v2879_v9 = vand.u32 127, %v34_v4  ;;  %vm227_vm8 = vcmask 523264  }
   0x3   :  { %2349 = vmatpush3.msk.msra.mxu0 %vm115_vm0, %v61_v1  ;;  %2372 = vmatprep.subr.mxu1 %v2792_v0  ;;  %v58_v10 = vld [vmem:[%s3549_s1 + $0x8] sm:$0xff]  ;;  %v2889_v11 = vld [vmem:[%s3550_s3 + $0x20] sm:$0xff]  ;;  %v2903_v13 = vld [vmem:[%s3550_s3 + $0x18] sm:$0xff]  ;;  %vm333_vm9 = vcmask 261120   ;;  %vm1118_vm13 = vcmask 785408   ;;  %vm2130_vm14 = vcmask 519168  }
   0x4   :  { %2350 = vmatprep.subr.mxu0 %v60_v3  ;;  %2373 = vmatpush3.msra.mxu1 %v2866_v5  ;;  %vm38_vm2 = vcmp.lt.s32.totalorder %v2877_v8, 4  ;;  %vm39_vm3 = vcmp.lt.s32.totalorder %v2879_v9, 32  ;;  %v57_v12 = vld [vmem:[%s3549_s1] sm:$0xff]  ;;  %v50_v15 = vld [vmem:[%s3551_s0 + $0x8] sm:$0xff]  ;;  %v2918_v16 = vld [vmem:[%s3550_s3 + $0x10] sm:$0xff]  ;;  %vm44_vm10 = vcmp.lt.s32.totalorder %v2879_v9, 64 }
   0x5   :  { %2351 = vmatpush3.msra.mxu0 %v60_v3  ;;  %2374 = vmatprep.subr.mxu1 %v2792_v0  ;;  %vm40_vm4 = vmxor %vm38_vm2, %vm39_vm3  ;;  %v49_v14 = vld [vmem:[%s3551_s0] sm:$0xff]  ;;  %v2929_v18 = vld [vmem:[%s3550_s3 + $0x8] sm:$0xff]  ;;  %vm2148_vm15 = vcmask 3072  }
   0x6   :  { %2352 = vmatprep.subr.mxu0 %v59_v6  ;;  %2375 = vmatpush3.msra.mxu1 %v2875_v7  ;;  %vm41_vm7 = vmxor %vm40_vm4, %vm2794_vm6  ;;  %v2937_v19 = vld [vmem:[%s3550_s3] sm:$0xff]  ;;  %v51_v38 = vld [vmem:[%s3551_s0 + $0x10] sm:$0xff] }
   0x7   :  { %2353 = vmatpush3.msra.mxu0 %v59_v6  ;;  %2376 = vmatprep.subr.mxu1 %v2792_v0  ;;  %v2922_v17 = vsel %vm41_vm7, 1.0, %v2792_v0  ;;  %v2984_v22 = vld [vmem:[%s3552_s2] sm:$0xff]  ;;  %s2796_s2 = smov 32   ;;  %v52_v39 = vld [vmem:[%s3551_s0 + $0x18] sm:$0xff]  ;;  %v54_v41 = vld [vmem:[%s3551_s0 + $0x28] sm:$0xff] }
   0x8   :  { %2354 = vmatprep.subr.mxu0 %v58_v10  ;;  %2377 = vmatpush3.msra.mxu1 %v2889_v11  ;;  %v225_v20 = vmul.f32 0.0, %v2922_v17  ;;  %v53_v40 = vld [vmem:[%s3551_s0 + $0x20] sm:$0xff]  ;;  %v55_v42 = vld [vmem:[%s3551_s0 + $0x30] sm:$0xff]  ;;  %v56_v43 = vld [vmem:[%s3551_s0 + $0x38] sm:$0xff] }
   0x9   :  { %2355 = vmatpush3.msra.mxu0 %v58_v10  ;;  %2378 = vmatprep.subr.mxu1 %v2792_v0  ;;  %vm45_vm11 = vmxor %vm38_vm2, %vm44_vm10 }
   0xa   :  { %2356 = vmatprep.subr.mxu0 %v57_v12  ;;  %2379 = vmatpush3.msra.mxu1 %v2903_v13  ;;  %vm46_vm12 = vmxor %vm45_vm11, %vm2794_vm6 }
   0xb   :  { %2357 = vmatpush3.msra.mxu0 %v57_v12  ;;  %2358 = vmatprep.mubr.msk.f32.mxu0 %vm90_vm5, %v49_v14 }
   0xc   :  { %2380 = vmatprep.subr.mxu1 %v2792_v0  ;;  %2359 = vmatmul.mubr.msk.f32.vlgmr.msra.gmra.mxu0 %vm90_vm5, %v50_v15 }
   0xd   :  { %2381 = vmatpush3.msra.mxu1 %v2918_v16  ;;  %2389 = vmatprep.subr.mxu0 %v2792_v0 }
   0xe   :  { %2382 = vmatprep.subr.mxu1 %v2792_v0  ;;  %2390 = vmatpush3.msra.mxu0 %v2855_v2 }
   0xf   :  { %2383 = vmatpush3.msra.mxu1 %v2929_v18  ;;  %2391 = vmatprep.subr.mxu0 %v2792_v0 }
  0x10   :  { %2384 = vmatprep.subr.mxu1 %v2792_v0  ;;  %2392 = vmatpush3.msra.mxu0 %v2866_v5 }
  0x11   :  { %2385 = vmatpush3.msra.mxu1 %v2937_v19  ;;  %2393 = vmatprep.subr.mxu0 %v2792_v0 }
  0x12   :  { %2387 = vmatmul.mubr.msk.f32.vlgmr.msra.gmra.mxu1 %vm227_vm8, %v225_v20  ;;  %2394 = vmatpush3.msra.mxu0 %v2875_v7 }
  0x13   :  { %2395 = vmatprep.subr.mxu0 %v2792_v0  ;;  %2408 = vmatprep.subr.mxu1 %v2792_v0 }
  0x14   :  { %2396 = vmatpush3.msra.mxu0 %v2889_v11  ;;  %2409 = vmatpush3.msra.mxu1 %v2855_v2 }
  0x15   :  { %2397 = vmatprep.subr.mxu0 %v2792_v0  ;;  %2410 = vmatprep.subr.mxu1 %v2792_v0 }
  0x16   :  { %2398 = vmatpush3.msra.mxu0 %v2903_v13  ;;  %2411 = vmatpush3.msra.mxu1 %v2866_v5 }
  0x17   :  { %2399 = vmatprep.subr.mxu0 %v2792_v0  ;;  %2412 = vmatprep.subr.mxu1 %v2792_v0 }
  0x18   :  { %2400 = vmatpush3.msra.mxu0 %v2918_v16  ;;  %2413 = vmatpush3.msra.mxu1 %v2875_v7 }
  0x19   :  { %2401 = vmatprep.subr.mxu0 %v2792_v0  ;;  %2414 = vmatprep.subr.mxu1 %v2792_v0 }
  0x1a   :  { %2402 = vmatpush3.msra.mxu0 %v2929_v18  ;;  %2415 = vmatpush3.msra.mxu1 %v2889_v11 }
  0x1b   :  { %2403 = vmatprep.subr.mxu0 %v2792_v0  ;;  %2416 = vmatprep.subr.mxu1 %v2792_v0 }
  0x1c   :  { %2404 = vmatpush3.msra.mxu0 %v2937_v19  ;;  %2417 = vmatpush3.msra.mxu1 %v2903_v13 }
  0x1d   :  { %2418 = vmatprep.subr.mxu1 %v2792_v0  ;;  %2424 = vmatprep.mubr.msk.f32.mxu1 %vm2793_vm1, %v2792_v0 }
  0x1e   :  { %2419 = vmatpush3.msra.mxu1 %v2918_v16  ;;  %2427 = vmatprep.subr.mxu0 %v2792_v0 }
  0x1f   :  { %2420 = vmatprep.subr.mxu1 %v2792_v0  ;;  %2361 = vmatprep.mubr.msk.f32.mxu0 %vm90_vm5, %v51_v38 }
  0x20   :  { %2421 = vmatpush3.msra.mxu1 %v2929_v18  ;;  %2362 = vmatmul.mubr.msk.f32.gmra.mxu0 %vm90_vm5, %v52_v39 }
  0x21   :  { %2422 = vmatprep.subr.mxu1 %v2792_v0  ;;  %2364 = vmatprep.mubr.msk.f32.mxu0 %vm90_vm5, %v53_v40 }
  0x22   :  { %2423 = vmatpush3.msra.mxu1 %v2937_v19 }
  0x23   :  { %2446 = vmatprep.subr.mxu1 %v2792_v0 }
  0x24   :  { %2365 = vmatmul.mubr.msk.f32.gmra.mxu0 %vm90_vm5, %v54_v41 }
  0x25   :  { %2367 = vmatprep.mubr.msk.f32.mxu0 %vm90_vm5, %v55_v42 }
  0x28   :  { %2368 = vmatmul.mubr.msk.f32.gmra.mxu0 %vm90_vm5, %v56_v43 }
  0x29   :  { %2405 = vmatprep.mubr.msk.f32.mxu0 %vm2793_vm1, %v2792_v0 }
  0xcc   :  { %v2979_v21 = vpop.f32.mrf.mxu0 }
  0xcd   :  { %v336_v57 = vadd.f32 %v2979_v21, %v2984_v22 }
  0xce   :  { %v185_v23 = vpop.f32.mrf.mxu0 }
  0xcf   :  { %v226_v24 = vadd.f32 %v2984_v22, %v185_v23 }
  0xd2   :  { %v297_v25 = vpop.f32.mrf.mxu1 }
  0xd3   :  { %v301_v26 = vadd.f32 %v297_v25, %v226_v24 }
  0xd4   :  { %v2388_v27 = vpop.f32.mrf.mxu1 }
  0xd5   :  { %2660 = vtanh.f32 %v301_v26  ;;  %v2166_v29 = vmul.f32 -1.442695, %v301_v26 }
  0xd7   :  { %2662 = vpow2.f32 %v2166_v29 }
  0xe0   :  { %v3049_v51 = vpop.f32.mrf.mxu0 }
  0xe2   :  { %v2661_v28 = vpop.eup %2660  ;;  %v195_v52 = vpop.f32.mrf.mxu0 }
  0xe3   :  { %311 = vrot.lane.b32.xlu0 %v2661_v28, %s2795_s18  ;;  %v444_v27 = vadd.f32 %v2984_v22, %v195_v52 }
  0xe4   :  { %v2663_v30 = vpop.eup %2662  ;;  %v3051_v53 = vpop.f32.mrf.mxu0 }
  0xe5   :  { %v305_v31 = vadd.f32 1.0, %v2663_v30 }
  0xe6   :  { %v3053_v54 = vpop.f32.mrf.mxu0 }
  0xe7   :  { %2664 = vrcp.f32 %v305_v31 }
  0xe8   :  { %v3055_v55 = vpop.f32.mrf.mxu0 }
  0xea   :  { %v3057_v56 = vpop.f32.mrf.mxu0 }
  0xf4   :  { %v2665_v32 = vpop.eup %2664 }
  0xf5   :  { %v309_v35 = vmul.f32 0.0, %v2665_v32 }
 0x155   :  { %v312_v33 = vpop.permute.xlu0 %311 }
 0x156   :  { %v314_v34 = vmul.f32 %v2665_v32, %v312_v33 }
 0x158   :  { %316 = vrot.lane.b32.xlu0 %v314_v34, %s2796_s2 }
 0x1ca   :  { %v317_v36 = vpop.permute.xlu0 %316 }
 0x1cb   :  { %v2989_v37 = vadd.f32 %v317_v36, %v309_v35 }
 0x1cd   :  { %2666 = vtanh.f32 %v2989_v37 }
 0x1da   :  { %v2667_v44 = vpop.eup %2666 }
 0x1db   :  { %322 = vrot.lane.b32.xlu1 %v2667_v44, %s2795_s18 }
 0x24d   :  { %v323_v45 = vpop.permute.xlu1 %322 }
 0x24e   :  { %v3019_v46 = vmul.f32 %v2665_v32, %v323_v45 }
 0x250   :  { %330 = vrot.lane.b32.xlu0 %v3019_v46, %s2795_s18  ;;  %327 = vrot.lane.b32.xlu1 %v3019_v46, %s2796_s2 }
 0x2c2   :  { %v331_v47 = vpop.permute.xlu0 %330  ;;  %v3025_v48 = vpop.permute.xlu1 %327 }
 0x2c3   :  { %v334_v49 = vsel %vm333_vm9, %v3025_v48, %v331_v47 }
 0x2c4   :  { %v335_v50 = vmul.f32 %v2922_v17, %v334_v49 }
 0x2c6   :  { %2406 = vmatmul.mubr.msk.f32.vlgmr.msra.gmra.mxu0 %vm227_vm8, %v335_v50  ;;  %v552_v50 = vadd.f32 %v3049_v51, %v2984_v22 }
 0x2c7   :  { %2428 = vmatpush3.msra.mxu0 %v2855_v2  ;;  %2443 = vmatprep.mubr.msk.f32.mxu0 %vm2793_vm1, %v2792_v0 }
 0x2c8   :  { %2429 = vmatprep.subr.mxu0 %v2792_v0 }
 0x2c9   :  { %2430 = vmatpush3.msra.mxu0 %v2866_v5 }
 0x2ca   :  { %2431 = vmatprep.subr.mxu0 %v2792_v0 }
 0x2cb   :  { %2432 = vmatpush3.msra.mxu0 %v2875_v7 }
 0x2cc   :  { %2433 = vmatprep.subr.mxu0 %v2792_v0 }
 0x2cd   :  { %2434 = vmatpush3.msra.mxu0 %v2889_v11 }
 0x2ce   :  { %2435 = vmatprep.subr.mxu0 %v2792_v0 }
 0x2cf   :  { %2436 = vmatpush3.msra.mxu0 %v2903_v13 }
 0x2d0   :  { %2437 = vmatprep.subr.mxu0 %v2792_v0 }
 0x2d1   :  { %2438 = vmatpush3.msra.mxu0 %v2918_v16 }
 0x2d2   :  { %2439 = vmatprep.subr.mxu0 %v2792_v0 }
 0x2d3   :  { %2440 = vmatpush3.msra.mxu0 %v2929_v18 }
 0x2d4   :  { %2441 = vmatprep.subr.mxu0 %v2792_v0 }
 0x2d5   :  { %2442 = vmatpush3.msra.mxu0 %v2937_v19 }
 0x2d6   :  { %2465 = vmatprep.subr.mxu0 %v2792_v0 }
 0x386   :  { %v406_v58 = vpop.f32.mrf.mxu0 }
 0x387   :  { %v410_v59 = vadd.f32 %v406_v58, %v336_v57 }
 0x388   :  { %v2407_v60 = vpop.f32.mrf.mxu0 }
 0x389   :  { %2668 = vtanh.f32 %v410_v59  ;;  %v2168_v62 = vmul.f32 -1.442695, %v410_v59 }
 0x38b   :  { %2670 = vpow2.f32 %v2168_v62 }
 0x396   :  { %v2669_v61 = vpop.eup %2668 }
 0x397   :  { %420 = vrot.lane.b32.xlu1 %v2669_v61, %s2795_s18 }
 0x398   :  { %v2671_v63 = vpop.eup %2670 }
 0x399   :  { %v414_v1 = vadd.f32 1.0, %v2671_v63 }
 0x39b   :  { %2672 = vrcp.f32 %v414_v1 }
 0x3a8   :  { %v2673_v3 = vpop.eup %2672 }
 0x3a9   :  { %v418_v10 = vmul.f32 %v2673_v3, %v2989_v37 }
 0x409   :  { %v421_v4 = vpop.permute.xlu1 %420 }
 0x40a   :  { %v423_v6 = vmul.f32 %v2673_v3, %v421_v4 }
 0x40c   :  { %425 = vrot.lane.b32.xlu0 %v423_v6, %s2796_s2 }
 0x47e   :  { %v426_v12 = vpop.permute.xlu0 %425 }
 0x47f   :  { %v428_v14 = vadd.f32 %v426_v12, %v418_v10 }
 0x481   :  { %2674 = vtanh.f32 %v428_v14 }
 0x48e   :  { %v2675_v15 = vpop.eup %2674 }
 0x48f   :  { %431 = vrot.lane.b32.xlu1 %v2675_v15, %s2795_s18 }
 0x501   :  { %v432_v20 = vpop.permute.xlu1 %431 }
 0x502   :  { %v3065_v21 = vmul.f32 %v2673_v3, %v432_v20 }
 0x504   :  { %439 = vrot.lane.b32.xlu1 %v3065_v21, %s2795_s18  ;;  %436 = vrot.lane.b32.xlu0 %v3065_v21, %s2796_s2 }
 0x576   :  { %v440_v23 = vpop.permute.xlu1 %439  ;;  %v3071_v24 = vpop.permute.xlu0 %436 }
 0x577   :  { %v442_v25 = vsel %vm333_vm9, %v3071_v24, %v440_v23 }
 0x578   :  { %v443_v26 = vmul.f32 %v2922_v17, %v442_v25 }
 0x57a   :  { %2425 = vmatmul.mubr.msk.f32.vlgmr.msra.gmra.mxu1 %vm227_vm8, %v443_v26  ;;  %v660_v26 = vadd.f32 %v2984_v22, %v3053_v54 }
 0x57b   :  { %2447 = vmatpush3.msra.mxu1 %v2855_v2  ;;  %2462 = vmatprep.mubr.msk.f32.mxu1 %vm2793_vm1, %v2792_v0 }
 0x57c   :  { %2448 = vmatprep.subr.mxu1 %v2792_v0 }
 0x57d   :  { %2449 = vmatpush3.msra.mxu1 %v2866_v5 }
 0x57e   :  { %2450 = vmatprep.subr.mxu1 %v2792_v0 }
 0x57f   :  { %2451 = vmatpush3.msra.mxu1 %v2875_v7 }
 0x580   :  { %2452 = vmatprep.subr.mxu1 %v2792_v0 }
 0x581   :  { %2453 = vmatpush3.msra.mxu1 %v2889_v11 }
 0x582   :  { %2454 = vmatprep.subr.mxu1 %v2792_v0 }
 0x583   :  { %2455 = vmatpush3.msra.mxu1 %v2903_v13 }
 0x584   :  { %2456 = vmatprep.subr.mxu1 %v2792_v0 }
 0x585   :  { %2457 = vmatpush3.msra.mxu1 %v2918_v16 }
 0x586   :  { %2458 = vmatprep.subr.mxu1 %v2792_v0 }
 0x587   :  { %2459 = vmatpush3.msra.mxu1 %v2929_v18 }
 0x588   :  { %2460 = vmatprep.subr.mxu1 %v2792_v0 }
 0x589   :  { %2461 = vmatpush3.msra.mxu1 %v2937_v19 }
 0x58a   :  { %2484 = vmatprep.subr.mxu1 %v2792_v0 }
 0x63a   :  { %v514_v28 = vpop.f32.mrf.mxu1 }
 0x63b   :  { %v518_v29 = vadd.f32 %v514_v28, %v444_v27 }
 0x63c   :  { %v2426_v30 = vpop.f32.mrf.mxu1 }
 0x63d   :  { %2676 = vtanh.f32 %v518_v29  ;;  %v2170_v32 = vmul.f32 -1.442695, %v518_v29 }
 0x63f   :  { %2678 = vpow2.f32 %v2170_v32 }
 0x64a   :  { %v2677_v31 = vpop.eup %2676 }
 0x64b   :  { %528 = vrot.lane.b32.xlu0 %v2677_v31, %s2795_s18 }
 0x64c   :  { %v2679_v33 = vpop.eup %2678 }
 0x64d   :  { %v522_v34 = vadd.f32 1.0, %v2679_v33 }
 0x64f   :  { %2680 = vrcp.f32 %v522_v34 }
 0x65c   :  { %v2681_v35 = vpop.eup %2680 }
 0x65d   :  { %v526_v38 = vmul.f32 %v2681_v35, %v428_v14 }
 0x6bd   :  { %v529_v36 = vpop.permute.xlu0 %528 }
 0x6be   :  { %v531_v37 = vmul.f32 %v2681_v35, %v529_v36 }
 0x6c0   :  { %533 = vrot.lane.b32.xlu1 %v531_v37, %s2796_s2 }
 0x732   :  { %v534_v39 = vpop.permute.xlu1 %533 }
 0x733   :  { %v536_v40 = vadd.f32 %v534_v39, %v526_v38 }
 0x735   :  { %2682 = vtanh.f32 %v536_v40 }
 0x742   :  { %v2683_v41 = vpop.eup %2682 }
 0x743   :  { %539 = vrot.lane.b32.xlu0 %v2683_v41, %s2795_s18 }
 0x7b5   :  { %v540_v42 = vpop.permute.xlu0 %539 }
 0x7b6   :  { %v3099_v43 = vmul.f32 %v2681_v35, %v540_v42 }
 0x7b8   :  { %547 = vrot.lane.b32.xlu0 %v3099_v43, %s2795_s18  ;;  %544 = vrot.lane.b32.xlu1 %v3099_v43, %s2796_s2 }
 0x82a   :  { %v548_v44 = vpop.permute.xlu0 %547  ;;  %v3105_v45 = vpop.permute.xlu1 %544 }
 0x82b   :  { %v550_v47 = vsel %vm333_vm9, %v3105_v45, %v548_v44 }
 0x82c   :  { %v551_v49 = vmul.f32 %v2922_v17, %v550_v47 }
 0x82e   :  { %2444 = vmatmul.mubr.msk.f32.vlgmr.msra.gmra.mxu0 %vm227_vm8, %v551_v49 }
 0x82f   :  { %2466 = vmatpush3.msra.mxu0 %v2855_v2  ;;  %2481 = vmatprep.mubr.msk.f32.mxu0 %vm2793_vm1, %v2792_v0 }
 0x830   :  { %2467 = vmatprep.subr.mxu0 %v2792_v0 }
 0x831   :  { %2468 = vmatpush3.msra.mxu0 %v2866_v5 }
 0x832   :  { %2469 = vmatprep.subr.mxu0 %v2792_v0 }
 0x833   :  { %2470 = vmatpush3.msra.mxu0 %v2875_v7 }
 0x834   :  { %2471 = vmatprep.subr.mxu0 %v2792_v0 }
 0x835   :  { %2472 = vmatpush3.msra.mxu0 %v2889_v11 }
 0x836   :  { %2473 = vmatprep.subr.mxu0 %v2792_v0 }
 0x837   :  { %2474 = vmatpush3.msra.mxu0 %v2903_v13 }
 0x838   :  { %2475 = vmatprep.subr.mxu0 %v2792_v0 }
 0x839   :  { %2476 = vmatpush3.msra.mxu0 %v2918_v16 }
 0x83a   :  { %2477 = vmatprep.subr.mxu0 %v2792_v0 }
 0x83b   :  { %2478 = vmatpush3.msra.mxu0 %v2929_v18 }
 0x83c   :  { %2479 = vmatprep.subr.mxu0 %v2792_v0 }
 0x83d   :  { %2480 = vmatpush3.msra.mxu0 %v2937_v19 }
 0x83e   :  { %2503 = vmatprep.subr.mxu0 %v2792_v0 }
 0x8ee   :  { %v622_v52 = vpop.f32.mrf.mxu0 }
 0x8ef   :  { %v626_v57 = vadd.f32 %v622_v52, %v552_v50 }
 0x8f0   :  { %v2445_v58 = vpop.f32.mrf.mxu0 }
 0x8f1   :  { %2684 = vtanh.f32 %v626_v57  ;;  %v2172_v60 = vmul.f32 -1.442695, %v626_v57 }
 0x8f3   :  { %2686 = vpow2.f32 %v2172_v60 }
 0x8fe   :  { %v2685_v59 = vpop.eup %2684 }
 0x8ff   :  { %636 = vrot.lane.b32.xlu1 %v2685_v59, %s2795_s18 }
 0x900   :  { %v2687_v61 = vpop.eup %2686 }
 0x901   :  { %v630_v62 = vadd.f32 1.0, %v2687_v61 }
 0x903   :  { %2688 = vrcp.f32 %v630_v62 }
 0x910   :  { %v2689_v63 = vpop.eup %2688 }
 0x911   :  { %v634_v4 = vmul.f32 %v2689_v63, %v536_v40 }
 0x971   :  { %v637_v1 = vpop.permute.xlu1 %636 }
 0x972   :  { %v639_v3 = vmul.f32 %v2689_v63, %v637_v1 }
 0x974   :  { %641 = vrot.lane.b32.xlu0 %v639_v3, %s2796_s2 }
 0x9e6   :  { %v642_v6 = vpop.permute.xlu0 %641 }
 0x9e7   :  { %v644_v51 = vadd.f32 %v642_v6, %v634_v4  ;;  %v876_v6 = vadd.f32 %v2984_v22, %v3057_v56 }
 0x9e9   :  { %2690 = vtanh.f32 %v644_v51 }
 0x9f6   :  { %v2691_v10 = vpop.eup %2690 }
 0x9f7   :  { %647 = vrot.lane.b32.xlu1 %v2691_v10, %s2795_s18 }
 0xa69   :  { %v648_v12 = vpop.permute.xlu1 %647 }
 0xa6a   :  { %v3134_v14 = vmul.f32 %v2689_v63, %v648_v12 }
 0xa6c   :  { %655 = vrot.lane.b32.xlu1 %v3134_v14, %s2795_s18  ;;  %652 = vrot.lane.b32.xlu0 %v3134_v14, %s2796_s2 }
 0xade   :  { %v656_v15 = vpop.permute.xlu1 %655  ;;  %v3140_v20 = vpop.permute.xlu0 %652 }
 0xadf   :  { %v658_v23 = vsel %vm333_vm9, %v3140_v20, %v656_v15 }
 0xae0   :  { %v659_v25 = vmul.f32 %v2922_v17, %v658_v23 }
 0xae2   :  { %2463 = vmatmul.mubr.msk.f32.vlgmr.msra.gmra.mxu1 %vm227_vm8, %v659_v25 }
 0xae3   :  { %2485 = vmatpush3.msra.mxu1 %v2855_v2  ;;  %2500 = vmatprep.mubr.msk.f32.mxu1 %vm2793_vm1, %v2792_v0 }
 0xae4   :  { %2486 = vmatprep.subr.mxu1 %v2792_v0 }
 0xae5   :  { %2487 = vmatpush3.msra.mxu1 %v2866_v5 }
 0xae6   :  { %2488 = vmatprep.subr.mxu1 %v2792_v0 }
 0xae7   :  { %2489 = vmatpush3.msra.mxu1 %v2875_v7 }
 0xae8   :  { %2490 = vmatprep.subr.mxu1 %v2792_v0 }
 0xae9   :  { %2491 = vmatpush3.msra.mxu1 %v2889_v11 }
 0xaea   :  { %2492 = vmatprep.subr.mxu1 %v2792_v0 }
 0xaeb   :  { %2493 = vmatpush3.msra.mxu1 %v2903_v13 }
 0xaec   :  { %2494 = vmatprep.subr.mxu1 %v2792_v0 }
 0xaed   :  { %2495 = vmatpush3.msra.mxu1 %v2918_v16 }
 0xaee   :  { %2496 = vmatprep.subr.mxu1 %v2792_v0 }
 0xaef   :  { %2497 = vmatpush3.msra.mxu1 %v2929_v18 }
 0xaf0   :  { %2498 = vmatprep.subr.mxu1 %v2792_v0 }
 0xaf1   :  { %2499 = vmatpush3.msra.mxu1 %v2937_v19 }
 0xba2   :  { %v730_v27 = vpop.f32.mrf.mxu1 }
 0xba3   :  { %v734_v28 = vadd.f32 %v730_v27, %v660_v26 }
 0xba4   :  { %v2464_v29 = vpop.f32.mrf.mxu1 }
 0xba5   :  { %2692 = vtanh.f32 %v734_v28  ;;  %v2174_v31 = vmul.f32 -1.442695, %v734_v28 }
 0xba7   :  { %2694 = vpow2.f32 %v2174_v31 }
 0xbb2   :  { %v2693_v30 = vpop.eup %2692 }
 0xbb3   :  { %744 = vrot.lane.b32.xlu0 %v2693_v30, %s2795_s18 }
 0xbb4   :  { %v2695_v32 = vpop.eup %2694 }
 0xbb5   :  { %v738_v33 = vadd.f32 1.0, %v2695_v32 }
 0xbb7   :  { %2696 = vrcp.f32 %v738_v33 }
 0xbc4   :  { %v2697_v34 = vpop.eup %2696 }
 0xbc5   :  { %v742_v37 = vmul.f32 %v2697_v34, %v644_v51 }
 0xc25   :  { %v745_v35 = vpop.permute.xlu0 %744 }
 0xc26   :  { %v747_v36 = vmul.f32 %v2697_v34, %v745_v35 }
 0xc28   :  { %749 = vrot.lane.b32.xlu1 %v747_v36, %s2796_s2 }
 0xc9a   :  { %v750_v38 = vpop.permute.xlu1 %749 }
 0xc9b   :  { %v752_v54 = vadd.f32 %v750_v38, %v742_v37 }
 0xc9d   :  { %2698 = vtanh.f32 %v752_v54 }
 0xcaa   :  { %v2699_v39 = vpop.eup %2698 }
 0xcab   :  { %755 = vrot.lane.b32.xlu0 %v2699_v39, %s2795_s18 }
 0xd1d   :  { %v756_v40 = vpop.permute.xlu0 %755 }
 0xd1e   :  { %v3168_v41 = vmul.f32 %v2697_v34, %v756_v40 }
 0xd20   :  { %763 = vrot.lane.b32.xlu0 %v3168_v41, %s2795_s18  ;;  %760 = vrot.lane.b32.xlu1 %v3168_v41, %s2796_s2 }
 0xd92   :  { %v764_v42 = vpop.permute.xlu0 %763  ;;  %v3174_v44 = vpop.permute.xlu1 %760 }
 0xd93   :  { %v766_v47 = vsel %vm333_vm9, %v3174_v44, %v764_v42 }
 0xd94   :  { %v767_v49 = vmul.f32 %v2922_v17, %v766_v47 }
 0xd96   :  { %2482 = vmatmul.mubr.msk.f32.vlgmr.msra.gmra.mxu0 %vm227_vm8, %v767_v49 }
 0xd97   :  { %2504 = vmatpush3.msra.mxu0 %v2855_v2  ;;  %2519 = vmatprep.mubr.msk.f32.mxu0 %vm2793_vm1, %v2792_v0  ;;  %v768_v2 = vadd.f32 %v3051_v53, %v2984_v22 }
 0xd98   :  { %2505 = vmatprep.subr.mxu0 %v2792_v0 }
 0xd99   :  { %2506 = vmatpush3.msra.mxu0 %v2866_v5 }
 0xd9a   :  { %2507 = vmatprep.subr.mxu0 %v2792_v0 }
 0xd9b   :  { %2508 = vmatpush3.msra.mxu0 %v2875_v7 }
 0xd9c   :  { %2509 = vmatprep.subr.mxu0 %v2792_v0 }
 0xd9d   :  { %2510 = vmatpush3.msra.mxu0 %v2889_v11 }
 0xd9e   :  { %2511 = vmatprep.subr.mxu0 %v2792_v0 }
 0xd9f   :  { %2512 = vmatpush3.msra.mxu0 %v2903_v13 }
 0xda0   :  { %2513 = vmatprep.subr.mxu0 %v2792_v0 }
 0xda1   :  { %2514 = vmatpush3.msra.mxu0 %v2918_v16 }
 0xda2   :  { %2515 = vmatprep.subr.mxu0 %v2792_v0 }
 0xda3   :  { %2516 = vmatpush3.msra.mxu0 %v2929_v18 }
 0xda4   :  { %2517 = vmatprep.subr.mxu0 %v2792_v0 }
 0xda5   :  { %2518 = vmatpush3.msra.mxu0 %v2937_v19 }
 0xda6   :  { %2566 = vmatprep.subr.mxu0 %v2792_v0 }
 0xe56   :  { %v838_v5 = vpop.f32.mrf.mxu0 }
 0xe57   :  { %v842_v7 = vadd.f32 %v838_v5, %v768_v2 }
 0xe58   :  { %v2483_v11 = vpop.f32.mrf.mxu0 }
 0xe59   :  { %2700 = vtanh.f32 %v842_v7  ;;  %v2176_v16 = vmul.f32 -1.442695, %v842_v7 }
 0xe5b   :  { %2702 = vpow2.f32 %v2176_v16  ;;  %v85_v16 = vld [vmem:[%s3553_s4 + $0x78] sm:$0xff] }
 0xe5c   :  { %2522 = vmatprep.subr.mxu1 %v85_v16 }
 0xe66   :  { %v2701_v13 = vpop.eup %2700 }
 0xe67   :  { %852 = vrot.lane.b32.xlu1 %v2701_v13, %s2795_s18 }
 0xe68   :  { %v2703_v50 = vpop.eup %2702 }
 0xe69   :  { %v846_v18 = vadd.f32 1.0, %v2703_v50  ;;  %v84_v50 = vld [vmem:[%s3553_s4 + $0x70] sm:$0xff] }
 0xe6b   :  { %2704 = vrcp.f32 %v846_v18  ;;  %v83_v18 = vld [vmem:[%s3553_s4 + $0x68] sm:$0xff] }
 0xe78   :  { %v2705_v52 = vpop.eup %2704 }
 0xe79   :  { %v850_v58 = vmul.f32 %v2705_v52, %v752_v54  ;;  %v984_v54 = vadd.f32 %v3055_v55, %v2984_v22 }
 0xed9   :  { %v853_v57 = vpop.permute.xlu1 %852 }
 0xeda   :  { %v855_v19 = vmul.f32 %v2705_v52, %v853_v57  ;;  %v82_v57 = vld [vmem:[%s3553_s4 + $0x60] sm:$0xff] }
 0xedc   :  { %857 = vrot.lane.b32.xlu0 %v855_v19, %s2796_s2  ;;  %v81_v19 = vld [vmem:[%s3553_s4 + $0x58] sm:$0xff] }
 0xf4e   :  { %v858_v59 = vpop.permute.xlu0 %857 }
 0xf4f   :  { %v860_v53 = vadd.f32 %v858_v59, %v850_v58  ;;  %v80_v58 = vld [vmem:[%s3553_s4 + $0x50] sm:$0xff]  ;;  %v79_v59 = vld [vmem:[%s3553_s4 + $0x48] sm:$0xff] }
 0xf51   :  { %2706 = vtanh.f32 %v860_v53 }
 0xf5e   :  { %v2707_v60 = vpop.eup %2706 }
 0xf5f   :  { %863 = vrot.lane.b32.xlu1 %v2707_v60, %s2795_s18  ;;  %v77_v60 = vld [vmem:[%s3553_s4 + $0x38] sm:$0xff] }
 0xfd1   :  { %v864_v61 = vpop.permute.xlu1 %863 }
 0xfd2   :  { %v3203_v62 = vmul.f32 %v2705_v52, %v864_v61  ;;  %v76_v61 = vld [vmem:[%s3553_s4 + $0x30] sm:$0xff] }
 0xfd4   :  { %871 = vrot.lane.b32.xlu1 %v3203_v62, %s2795_s18  ;;  %868 = vrot.lane.b32.xlu0 %v3203_v62, %s2796_s2 }
0x1046   :  { %v872_v63 = vpop.permute.xlu1 %871  ;;  %v3209_v1 = vpop.permute.xlu0 %868 }
0x1047   :  { %v874_v3 = vsel %vm333_vm9, %v3209_v1, %v872_v63  ;;  %v75_v63 = vld [vmem:[%s3553_s4 + $0x28] sm:$0xff] }
0x1048   :  { %v875_v4 = vmul.f32 %v2922_v17, %v874_v3  ;;  %v74_v3 = vld [vmem:[%s3553_s4 + $0x20] sm:$0xff] }
0x104a   :  { %2501 = vmatmul.mubr.msk.f32.vlgmr.msra.gmra.mxu1 %vm227_vm8, %v875_v4  ;;  %v73_v4 = vld [vmem:[%s3553_s4 + $0x18] sm:$0xff] }
0x104b   :  { %2523 = vmatpush3.msra.mxu1 %v85_v16 }
0x104c   :  { %2524 = vmatprep.subr.mxu1 %v84_v50 }
0x104d   :  { %2525 = vmatpush3.msra.mxu1 %v84_v50 }
0x104e   :  { %2526 = vmatprep.subr.mxu1 %v83_v18 }
0x104f   :  { %2527 = vmatpush3.msra.mxu1 %v83_v18 }
0x1050   :  { %2528 = vmatprep.subr.mxu1 %v82_v57 }
0x1051   :  { %2529 = vmatpush3.msra.mxu1 %v82_v57 }
0x1052   :  { %2530 = vmatprep.subr.mxu1 %v81_v19 }
0x1053   :  { %2531 = vmatpush3.msra.mxu1 %v81_v19 }
0x1054   :  { %2532 = vmatprep.subr.mxu1 %v80_v58 }
0x1055   :  { %2533 = vmatpush3.msra.mxu1 %v80_v58 }
0x1056   :  { %2534 = vmatprep.subr.mxu1 %v79_v59 }
0x1057   :  { %2535 = vmatpush3.msra.mxu1 %v79_v59 }
0x110a   :  { %v946_v51 = vpop.f32.mrf.mxu1 }
0x110b   :  { %v950_v10 = vadd.f32 %v946_v51, %v876_v6  ;;  %v72_v6 = vld [vmem:[%s3553_s4 + $0x10] sm:$0xff]  ;;  %v3288_v51 = vld [vmem:[%s3554_s6 + $0x18] sm:$0xff] }
0x110c   :  { %v2502_v12 = vpop.f32.mrf.mxu1 }
0x110d   :  { %2708 = vtanh.f32 %v950_v10  ;;  %v2178_v23 = vmul.f32 -1.442695, %v950_v10  ;;  %v71_v10 = vld [vmem:[%s3553_s4 + $0x8] sm:$0xff]  ;;  %v3298_v12 = vld [vmem:[%s3554_s6 + $0x10] sm:$0xff] }
0x110f   :  { %2710 = vpow2.f32 %v2178_v23  ;;  %v3308_v23 = vld [vmem:[%s3554_s6 + $0x8] sm:$0xff] }
0x111a   :  { %v2709_v15 = vpop.eup %2708 }
0x111b   :  { %960 = vrot.lane.b32.xlu0 %v2709_v15, %s2795_s18  ;;  %v70_v15 = vld [vmem:[%s3553_s4] sm:$0xff] }
0x111c   :  { %v2711_v25 = vpop.eup %2710 }
0x111d   :  { %v954_v26 = vadd.f32 1.0, %v2711_v25 }
0x111f   :  { %2712 = vrcp.f32 %v954_v26 }
0x112c   :  { %v2713_v27 = vpop.eup %2712 }
0x112d   :  { %v958_v30 = vmul.f32 %v2713_v27, %v860_v53  ;;  %v78_v53 = vld [vmem:[%s3553_s4 + $0x40] sm:$0xff]  ;;  %s2797_s4 = smov 96  }
0x112e   :  { %2536 = vmatprep.subr.mxu1 %v78_v53 }
0x112f   :  { %2537 = vmatpush3.msra.mxu1 %v78_v53 }
0x1130   :  { %2538 = vmatprep.subr.mxu1 %v77_v60 }
0x1131   :  { %2539 = vmatpush3.msra.mxu1 %v77_v60 }
0x1132   :  { %2540 = vmatprep.subr.mxu1 %v76_v61 }
0x1133   :  { %2541 = vmatpush3.msra.mxu1 %v76_v61 }
0x1134   :  { %2542 = vmatprep.subr.mxu1 %v75_v63 }
0x1135   :  { %2543 = vmatpush3.msra.mxu1 %v75_v63 }
0x1136   :  { %2544 = vmatprep.subr.mxu1 %v74_v3 }
0x1137   :  { %2545 = vmatpush3.msra.mxu1 %v74_v3 }
0x1138   :  { %2546 = vmatprep.subr.mxu1 %v73_v4 }
0x1139   :  { %2547 = vmatpush3.msra.mxu1 %v73_v4 }
0x113a   :  { %2548 = vmatprep.subr.mxu1 %v72_v6 }
0x113b   :  { %2549 = vmatpush3.msra.mxu1 %v72_v6 }
0x113c   :  { %2550 = vmatprep.subr.mxu1 %v71_v10 }
0x113d   :  { %2551 = vmatpush3.msra.mxu1 %v71_v10 }
0x113e   :  { %2552 = vmatprep.subr.mxu1 %v70_v15 }
0x113f   :  { %2553 = vmatpush3.msra.mxu1 %v70_v15 }
0x1140   :  { %2610 = vmatprep.subr.mxu1 %v2792_v0 }
0x118d   :  { %v961_v28 = vpop.permute.xlu0 %960 }
0x118e   :  { %v963_v29 = vmul.f32 %v2713_v27, %v961_v28 }
0x1190   :  { %965 = vrot.lane.b32.xlu1 %v963_v29, %s2796_s2 }
0x1202   :  { %v966_v31 = vpop.permute.xlu1 %965 }
0x1203   :  { %v968_v56 = vadd.f32 %v966_v31, %v958_v30 }
0x1205   :  { %2714 = vtanh.f32 %v968_v56 }
0x1212   :  { %v2715_v32 = vpop.eup %2714 }
0x1213   :  { %971 = vrot.lane.b32.xlu0 %v2715_v32, %s2795_s18  ;;  %v3347_v32 = vsel %vm46_vm12, 1.0, %v2792_v0 }
0x1285   :  { %v972_v33 = vpop.permute.xlu0 %971 }
0x1286   :  { %v3220_v34 = vmul.f32 %v2713_v27, %v972_v33  ;;  %v3318_v27 = vld [vmem:[%s3554_s6] sm:$0xff] }
0x1288   :  { %979 = vrot.lane.b32.xlu0 %v3220_v34, %s2795_s18  ;;  %976 = vrot.lane.b32.xlu1 %v3220_v34, %s2796_s2  ;;  %v1102_v29 = vrot.slane %v3220_v34, 4 }
0x12fa   :  { %v980_v35 = vpop.permute.xlu0 %979  ;;  %v3226_v36 = vpop.permute.xlu1 %976 }
0x12fb   :  { %v982_v37 = vsel %vm333_vm9, %v3226_v36, %v980_v35 }
0x12fc   :  { %v983_v38 = vmul.f32 %v2922_v17, %v982_v37 }
0x12fe   :  { %2520 = vmatmul.mubr.msk.f32.vlgmr.msra.gmra.mxu0 %vm227_vm8, %v983_v38 }
0x12ff   :  { %2574 = vmatprep.mubr.msk.f32.mxu0 %vm2793_vm1, %v2792_v0  ;;  %2567 = vmatpush3.msra.mxu0 %v3288_v51 }
0x1300   :  { %2568 = vmatprep.subr.mxu0 %v2792_v0 }
0x1301   :  { %2569 = vmatpush3.msra.mxu0 %v3298_v12 }
0x1302   :  { %2570 = vmatprep.subr.mxu0 %v2792_v0 }
0x1303   :  { %2571 = vmatpush3.msra.mxu0 %v3308_v23 }
0x1304   :  { %2572 = vmatprep.subr.mxu0 %v2792_v0 }
0x1305   :  { %2573 = vmatpush3.msra.mxu0 %v3318_v27 }
0x1306   :  { %2575 = vmatmul.mubr.f32.vlgmr.msra.gmra.mxu0 %v2792_v0  ;;  %2577 = vmatprep.subr.mxu0 %v2792_v0 }
0x1307   :  { %2578 = vmatpush3.msra.mxu0 %v3288_v51  ;;  %2585 = vmatprep.mubr.msk.f32.mxu0 %vm2793_vm1, %v2792_v0 }
0x1308   :  { %2579 = vmatprep.subr.mxu0 %v2792_v0 }
0x1309   :  { %2580 = vmatpush3.msra.mxu0 %v3298_v12 }
0x130a   :  { %2581 = vmatprep.subr.mxu0 %v2792_v0 }
0x130b   :  { %2582 = vmatpush3.msra.mxu0 %v3308_v23 }
0x130c   :  { %2583 = vmatprep.subr.mxu0 %v2792_v0 }
0x130d   :  { %2584 = vmatpush3.msra.mxu0 %v3318_v27 }
0x130e   :  { %2588 = vmatprep.subr.mxu0 %v2792_v0 }
0x13be   :  { %v1054_v39 = vpop.f32.mrf.mxu0 }
0x13bf   :  { %v1058_v40 = vadd.f32 %v1054_v39, %v984_v54 }
0x13c0   :  { %v2521_v42 = vpop.f32.mrf.mxu0 }
0x13c1   :  { %2716 = vtanh.f32 %v1058_v40  ;;  %v2180_v49 = vmul.f32 -1.442695, %v1058_v40 }
0x13c3   :  { %2718 = vpow2.f32 %v2180_v49 }
0x13ce   :  { %v2717_v47 = vpop.eup %2716 }
0x13cf   :  { %1068 = vrot.lane.b32.xlu1 %v2717_v47, %s2795_s18  ;;  %v3370_v47 = vld [vmem:[%s3555_s5] sm:$0xff] }
0x13d0   :  { %v2719_v2 = vpop.eup %2718 }
0x13d1   :  { %v1062_v5 = vadd.f32 1.0, %v2719_v2 }
0x13d3   :  { %2720 = vrcp.f32 %v1062_v5 }
0x13e0   :  { %v3237_v17 = vpop.eup %2720 }
0x13e1   :  { %v1066_v22 = vmul.f32 %v3237_v17, %v968_v56 }
0x1441   :  { %v1069_v7 = vpop.permute.xlu1 %1068 }
0x1442   :  { %v1071_v11 = vmul.f32 %v3237_v17, %v1069_v7 }
0x1444   :  { %1073 = vrot.lane.b32.xlu0 %v1071_v11, %s2796_s2 }
0x14b6   :  { %v1074_v55 = vpop.permute.xlu0 %1073 }
0x14b7   :  { %v1076_v13 = vadd.f32 %v1074_v55, %v1066_v22 }
0x14b9   :  { %2722 = vtanh.f32 %v1076_v13 }
0x14c6   :  { %v2723_v52 = vpop.eup %2722 }
0x14c7   :  { %1079 = vrot.lane.b32.xlu1 %v2723_v52, %s2795_s18 }
0x1539   :  { %v1080_v25 = vpop.permute.xlu1 %1079 }
0x153a   :  { %v3312_v26 = vmul.f32 %v3237_v17, %v1080_v25 }
0x153c   :  { %v1106_v28 = vrot.slane %v3312_v26, 4 }
0x153e   :  { %1113 = vrot.lane.b32.xlu1 %v1106_v28, %s2797_s4  ;;  %1110 = vrot.lane.b32.xlu0 %v1106_v28, %s2795_s18 }
0x1542   :  { %1125 = vrot.lane.b32.xlu1 %v1102_v29, %s2797_s4  ;;  %1122 = vrot.lane.b32.xlu0 %v1102_v29, %s2795_s18  ;;  %v1099_v29 = vrot.slane %v3203_v62, 4 }
0x15b0   :  { %v1114_v30 = vpop.permute.xlu1 %1113  ;;  %v1111_v31 = vpop.permute.xlu0 %1110 }
0x15b1   :  { %v1116_v56 = vsel %vm333_vm9, %v3025_v48, %v1111_v31 }
0x15b2   :  { %v1117_v33 = vsel %vm227_vm8, %v1116_v56, %v1114_v30  ;;  %v1096_v30 = vrot.slane %v3168_v41, 4 }
0x15b3   :  { %v1119_v35 = vsel %vm1118_vm13, %v1117_v33, %v3019_v46 }
0x15b4   :  { %v1126_v9 = vpop.permute.xlu1 %1125  ;;  %v1123_v37 = vpop.permute.xlu0 %1122  ;;  %v1120_v8 = vmul.f32 %v3347_v32, %v1119_v35 }
0x15b5   :  { %v1128_v38 = vsel %vm333_vm9, %v3071_v24, %v1123_v37  ;;  %v1377_v24 = vpop.f32.mrf.mxu0 }
0x15b6   :  { %v1129_v54 = vsel %vm227_vm8, %v1128_v38, %v1126_v9  ;;  %2554 = vmatprep.mubr.f32.mxu1 %v1120_v8 }
0x15b7   :  { %v1130_v48 = vsel %vm1118_vm13, %v1129_v54, %v3065_v21  ;;  %v2576_v40 = vpop.f32.mrf.mxu0 }
0x15b8   :  { %v1131_v39 = vmul.f32 %v3347_v32, %v1130_v48 }
0x15ba   :  { %2555 = vmatmul.mubr.f32.vlgmr.msra.gmra.mxu1 %v1131_v39 }
0x15bb   :  { %2611 = vmatpush3.msra.mxu1 %v3288_v51 }
0x15bc   :  { %2612 = vmatprep.subr.mxu1 %v2792_v0 }
0x15bd   :  { %2613 = vmatpush3.msra.mxu1 %v3298_v12 }
0x15be   :  { %2614 = vmatprep.subr.mxu1 %v2792_v0 }
0x15bf   :  { %2615 = vmatpush3.msra.mxu1 %v3308_v23 }
0x15c0   :  { %2616 = vmatprep.subr.mxu1 %v2792_v0 }
0x15c1   :  { %2617 = vmatpush3.msra.mxu1 %v3318_v27 }
0x15c2   :  { %2632 = vmatprep.subr.mxu1 %v2792_v0 }
0x167a   :  { %v2556_v42 = vpop.f32.mrf.mxu1 }
0x167b   :  { %v1406_v53 = vadd.f32 %v2556_v42, %v3370_v47 }
0x167c   :  { %v1267_v49 = vpop.f32.mrf.mxu1 }
0x167d   :  { %v1307_v2 = vadd.f32 %v3370_v47, %v1267_v49 }
0x167f   :  { %v1381_v5 = vadd.f32 %v1377_v24, %v1307_v2 }
0x1681   :  { %2724 = vtanh.f32 %v1381_v5  ;;  %v2181_v7 = vmul.f32 -1.442695, %v1381_v5 }
0x1683   :  { %2726 = vpow2.f32 %v2181_v7 }
0x168e   :  { %v2725_v17 = vpop.eup %2724 }
0x168f   :  { %1391 = vrot.lane.b32.xlu0 %v2725_v17, %s2795_s18 }
0x1690   :  { %v2727_v11 = vpop.eup %2726 }
0x1691   :  { %v1385_v22 = vadd.f32 1.0, %v2727_v11 }
0x1693   :  { %2728 = vrcp.f32 %v1385_v22 }
0x16a0   :  { %v2729_v55 = vpop.eup %2728 }
0x16a1   :  { %v1389_v50 = vmul.f32 0.0, %v2729_v55 }
0x1701   :  { %v1392_v13 = vpop.permute.xlu0 %1391 }
0x1702   :  { %v1394_v16 = vmul.f32 %v2729_v55, %v1392_v13 }
0x1704   :  { %1396 = vrot.lane.b32.xlu1 %v1394_v16, %s2796_s2 }
0x1776   :  { %v1397_v18 = vpop.permute.xlu1 %1396 }
0x1777   :  { %v1399_v52 = vadd.f32 %v1397_v18, %v1389_v50 }
0x1779   :  { %2730 = vtanh.f32 %v1399_v52 }
0x1786   :  { %v2731_v57 = vpop.eup %2730 }
0x1787   :  { %1402 = vrot.lane.b32.xlu0 %v2731_v57, %s2795_s18 }
0x17f9   :  { %v1403_v19 = vpop.permute.xlu0 %1402 }
0x17fa   :  { %v3376_v58 = vmul.f32 %v2729_v55, %v1403_v19 }
0x17fc   :  { %1408 = vrot.lane.b32.xlu1 %v3376_v58, %s2796_s2 }
0x186e   :  { %v1409_v59 = vpop.permute.xlu1 %1408 }
0x186f   :  { %2586 = vmatmul.mubr.msk.f32.vlgmr.msra.gmra.mxu0 %vm333_vm9, %v1409_v59 }
0x1870   :  { %2589 = vmatpush3.msra.mxu0 %v3288_v51  ;;  %2596 = vmatprep.mubr.msk.f32.mxu0 %vm2793_vm1, %v2792_v0 }
0x1871   :  { %2590 = vmatprep.subr.mxu0 %v2792_v0 }
0x1872   :  { %2591 = vmatpush3.msra.mxu0 %v3298_v12 }
0x1873   :  { %2592 = vmatprep.subr.mxu0 %v2792_v0 }
0x1874   :  { %2593 = vmatpush3.msra.mxu0 %v3308_v23 }
0x1875   :  { %2594 = vmatprep.subr.mxu0 %v2792_v0 }
0x1876   :  { %2595 = vmatpush3.msra.mxu0 %v3318_v27 }
0x1877   :  { %2599 = vmatprep.subr.mxu0 %v2792_v0 }
0x192f   :  { %v1478_v60 = vpop.f32.mrf.mxu0 }
0x1930   :  { %v1482_v61 = vadd.f32 %v1478_v60, %v1406_v53 }
0x1931   :  { %v2587_v63 = vpop.f32.mrf.mxu0 }
0x1932   :  { %2732 = vtanh.f32 %v1482_v61  ;;  %v2183_v4 = vmul.f32 -1.442695, %v1482_v61 }
0x1934   :  { %2734 = vpow2.f32 %v2183_v4 }
0x193f   :  { %v2733_v3 = vpop.eup %2732 }
0x1940   :  { %1492 = vrot.lane.b32.xlu0 %v2733_v3, %s2795_s18 }
0x1941   :  { %v2735_v6 = vpop.eup %2734 }
0x1942   :  { %v1486_v10 = vadd.f32 1.0, %v2735_v6 }
0x1944   :  { %2736 = vrcp.f32 %v1486_v10 }
0x1951   :  { %v2737_v15 = vpop.eup %2736 }
0x1952   :  { %v1490_v31 = vmul.f32 %v2737_v15, %v1399_v52 }
0x19b2   :  { %v1493_v25 = vpop.permute.xlu0 %1492 }
0x19b3   :  { %v1495_v28 = vmul.f32 %v2737_v15, %v1493_v25 }
0x19b5   :  { %1497 = vrot.lane.b32.xlu1 %v1495_v28, %s2796_s2 }
0x19b9   :  { %1133 = vrot.lane.b32.xlu1 %v1099_v29, %s2795_s18 }
0x19bd   :  { %1144 = vrot.lane.b32.xlu1 %v1096_v30, %s2795_s18 }
0x1a27   :  { %v1498_v56 = vpop.permute.xlu1 %1497 }
0x1a28   :  { %v1500_v33 = vadd.f32 %v1498_v56, %v1490_v31 }
0x1a2a   :  { %2738 = vtanh.f32 %v1500_v33 }
0x1a2b   :  { %v1134_v9 = vpop.permute.xlu1 %1133 }
0x1a2c   :  { %v1139_v38 = vsel %vm333_vm9, %v3105_v45, %v1134_v9 }
0x1a2f   :  { %v1145_v48 = vpop.permute.xlu1 %1144 }
0x1a30   :  { %v1150_v42 = vsel %vm333_vm9, %v3140_v20, %v1145_v48 }
0x1a37   :  { %v2739_v35 = vpop.eup %2738 }
0x1a38   :  { %1503 = vrot.lane.b32.xlu0 %v2739_v35, %s2795_s18 }
0x1a3c   :  { %1136 = vrot.lane.b32.xlu0 %v1099_v29, %s2797_s4 }
0x1a40   :  { %1147 = vrot.lane.b32.xlu0 %v1096_v30, %s2797_s4 }
0x1aaa   :  { %v1504_v37 = vpop.permute.xlu0 %1503 }
0x1aab   :  { %v1506_v8 = vmul.f32 %v2737_v15, %v1504_v37  ;;  %v1093_v37 = vrot.slane %v3134_v14, 4 }
0x1aad   :  { %1509 = vrot.lane.b32.xlu1 %v1506_v8, %s2796_s2  ;;  %v1090_v8 = vrot.slane %v3099_v43, 4 }
0x1aae   :  { %v1137_v54 = vpop.permute.xlu0 %1136 }
0x1aaf   :  { %v1140_v39 = vsel %vm227_vm8, %v1139_v38, %v1137_v54  ;;  %v1087_v38 = vrot.slane %v3065_v21, 4  ;;  %v1083_v54 = vrot.slane %v3019_v46, 4 }
0x1ab0   :  { %v1141_v24 = vsel %vm1118_vm13, %v1140_v39, %v3099_v43 }
0x1ab1   :  { %v1142_v40 = vmul.f32 %v3347_v32, %v1141_v24 }
0x1ab2   :  { %v1148_v49 = vpop.permute.xlu0 %1147 }
0x1ab3   :  { %v1151_v2 = vsel %vm227_vm8, %v1150_v42, %v1148_v49  ;;  %2557 = vmatprep.mubr.f32.mxu1 %v1142_v40 }
0x1ab4   :  { %v1152_v5 = vsel %vm1118_vm13, %v1151_v2, %v3134_v14 }
0x1ab5   :  { %v1153_v45 = vmul.f32 %v3347_v32, %v1152_v5 }
0x1ab7   :  { %2558 = vmatmul.mubr.f32.gmra.mxu1 %v1153_v45 }
0x1b1f   :  { %v1510_v17 = vpop.permute.xlu1 %1509 }
0x1b20   :  { %2597 = vmatmul.mubr.msk.f32.vlgmr.msra.gmra.mxu0 %vm333_vm9, %v1510_v17 }
0x1b21   :  { %2600 = vmatpush3.msra.mxu0 %v3288_v51  ;;  %2607 = vmatprep.mubr.msk.f32.mxu0 %vm2793_vm1, %v2792_v0 }
0x1b22   :  { %2601 = vmatprep.subr.mxu0 %v2792_v0 }
0x1b23   :  { %2602 = vmatpush3.msra.mxu0 %v3298_v12 }
0x1b24   :  { %2603 = vmatprep.subr.mxu0 %v2792_v0 }
0x1b25   :  { %2604 = vmatpush3.msra.mxu0 %v3308_v23 }
0x1b26   :  { %2605 = vmatprep.subr.mxu0 %v2792_v0 }
0x1b27   :  { %2606 = vmatpush3.msra.mxu0 %v3318_v27 }
0x1b28   :  { %2621 = vmatprep.subr.mxu0 %v2792_v0 }
0x1b77   :  { %v2559_v20 = vpop.f32.mrf.mxu1 }
0x1b78   :  { %v1608_v10 = vadd.f32 %v2559_v20, %v3370_v47 }
0x1b79   :  { %v1277_v7 = vpop.f32.mrf.mxu1 }
0x1b7a   :  { %v1507_v11 = vadd.f32 %v3370_v47, %v1277_v7 }
0x1be0   :  { %v1579_v22 = vpop.f32.mrf.mxu0 }
0x1be1   :  { %v1583_v55 = vadd.f32 %v1579_v22, %v1507_v11 }
0x1be2   :  { %v2598_v13 = vpop.f32.mrf.mxu0 }
0x1be3   :  { %2740 = vtanh.f32 %v1583_v55  ;;  %v2185_v50 = vmul.f32 -1.442695, %v1583_v55 }
0x1be5   :  { %2742 = vpow2.f32 %v2185_v50 }
0x1bf0   :  { %v2741_v16 = vpop.eup %2740 }
0x1bf1   :  { %1593 = vrot.lane.b32.xlu0 %v2741_v16, %s2795_s18 }
0x1bf2   :  { %v2743_v18 = vpop.eup %2742 }
0x1bf3   :  { %v1587_v52 = vadd.f32 1.0, %v2743_v18 }
0x1bf5   :  { %2744 = vrcp.f32 %v1587_v52 }
0x1c02   :  { %v2745_v57 = vpop.eup %2744 }
0x1c03   :  { %v1591_v53 = vmul.f32 %v2745_v57, %v1500_v33 }
0x1c63   :  { %v1594_v19 = vpop.permute.xlu0 %1593 }
0x1c64   :  { %v1596_v59 = vmul.f32 %v2745_v57, %v1594_v19 }
0x1c66   :  { %1598 = vrot.lane.b32.xlu1 %v1596_v59, %s2796_s2 }
0x1cd8   :  { %v1599_v60 = vpop.permute.xlu1 %1598 }
0x1cd9   :  { %v1601_v61 = vadd.f32 %v1599_v60, %v1591_v53 }
0x1cdb   :  { %2746 = vtanh.f32 %v1601_v61 }
0x1ce8   :  { %v2747_v63 = vpop.eup %2746 }
0x1ce9   :  { %1604 = vrot.lane.b32.xlu0 %v2747_v63, %s2795_s18 }
0x1d5b   :  { %v1605_v3 = vpop.permute.xlu0 %1604 }
0x1d5c   :  { %v1607_v4 = vmul.f32 %v2745_v57, %v1605_v3 }
0x1d5e   :  { %1610 = vrot.lane.b32.xlu1 %v1607_v4, %s2796_s2 }
0x1dd0   :  { %v1611_v6 = vpop.permute.xlu1 %1610 }
0x1dd1   :  { %2608 = vmatmul.mubr.msk.f32.vlgmr.msra.gmra.mxu0 %vm333_vm9, %v1611_v6 }
0x1dd2   :  { %2622 = vmatpush3.msra.mxu0 %v3288_v51  ;;  %2629 = vmatprep.mubr.msk.f32.mxu0 %vm2793_vm1, %v2792_v0 }
0x1dd3   :  { %2623 = vmatprep.subr.mxu0 %v2792_v0 }
0x1dd4   :  { %2624 = vmatpush3.msra.mxu0 %v3298_v12 }
0x1dd5   :  { %2625 = vmatprep.subr.mxu0 %v2792_v0 }
0x1dd6   :  { %2626 = vmatpush3.msra.mxu0 %v3308_v23 }
0x1dd7   :  { %2627 = vmatprep.subr.mxu0 %v2792_v0 }
0x1dd8   :  { %2628 = vmatpush3.msra.mxu0 %v3318_v27 }
0x1dd9   :  { %2643 = vmatprep.subr.mxu0 %v2792_v0 }
0x1e91   :  { %v1680_v15 = vpop.f32.mrf.mxu0 }
0x1e92   :  { %v1684_v25 = vadd.f32 %v1680_v15, %v1608_v10 }
0x1e93   :  { %v2609_v28 = vpop.f32.mrf.mxu0 }
0x1e94   :  { %2748 = vtanh.f32 %v1684_v25  ;;  %v2187_v30 = vmul.f32 -1.442695, %v1684_v25 }
0x1e96   :  { %2750 = vpow2.f32 %v2187_v30 }
0x1ea1   :  { %v2749_v29 = vpop.eup %2748 }
0x1ea2   :  { %1694 = vrot.lane.b32.xlu0 %v2749_v29, %s2795_s18 }
0x1ea3   :  { %v2751_v31 = vpop.eup %2750 }
0x1ea4   :  { %v1688_v56 = vadd.f32 1.0, %v2751_v31 }
0x1ea6   :  { %2752 = vrcp.f32 %v1688_v56 }
0x1eb3   :  { %v2753_v33 = vpop.eup %2752 }
0x1eb4   :  { %v1692_v48 = vmul.f32 %v2753_v33, %v1601_v61 }
0x1f14   :  { %v1695_v35 = vpop.permute.xlu0 %1694 }
0x1f15   :  { %v1697_v9 = vmul.f32 %v2753_v33, %v1695_v35 }
0x1f17   :  { %1699 = vrot.lane.b32.xlu1 %v1697_v9, %s2796_s2 }
0x1f1b   :  { %1155 = vrot.lane.b32.xlu1 %v1093_v37, %s2795_s18 }
0x1f1f   :  { %1166 = vrot.lane.b32.xlu1 %v1090_v8, %s2795_s18 }
0x1f23   :  { %1177 = vrot.lane.b32.xlu1 %v1087_v38, %s2795_s18 }
0x1f27   :  { %1187 = vrot.lane.b32.xlu1 %v3312_v26, %s2796_s2 }
0x1f2b   :  { %1194 = vrot.lane.b32.xlu1 %v1083_v54, %s2797_s4 }
0x1f89   :  { %v1700_v39 = vpop.permute.xlu1 %1699 }
0x1f8a   :  { %v3454_v14 = vadd.f32 %v1700_v39, %v1692_v48 }
0x1f8c   :  { %2754 = vtanh.f32 %v3454_v14 }
0x1f8d   :  { %v1156_v46 = vpop.permute.xlu1 %1155 }
0x1f8e   :  { %v1161_v42 = vsel %vm333_vm9, %v3174_v44, %v1156_v46 }
0x1f91   :  { %v1167_v21 = vpop.permute.xlu1 %1166 }
0x1f92   :  { %v1172_v20 = vsel %vm333_vm9, %v3209_v1, %v1167_v21 }
0x1f95   :  { %v1178_v2 = vpop.permute.xlu1 %1177 }
0x1f96   :  { %v1183_v13 = vsel %vm333_vm9, %v3226_v36, %v1178_v2 }
0x1f99   :  { %v2755_v43 = vpop.eup %2754  ;;  %v1188_v44 = vpop.permute.xlu1 %1187 }
0x1f9a   :  { %1705 = vrot.lane.b32.xlu0 %v2755_v43, %s2795_s18 }
0x1f9d   :  { %v1195_v52 = vpop.permute.xlu1 %1194 }
0x1f9e   :  { %1158 = vrot.lane.b32.xlu0 %v1093_v37, %s2797_s4 }
0x1fa2   :  { %1169 = vrot.lane.b32.xlu0 %v1090_v8, %s2797_s4 }
0x1fa6   :  { %1180 = vrot.lane.b32.xlu0 %v1087_v38, %s2797_s4 }
0x1faa   :  { %1191 = vrot.lane.b32.xlu0 %v1083_v54, %s2795_s18 }
0x200c   :  { %v1706_v24 = vpop.permute.xlu0 %1705 }
0x200d   :  { %v1708_v40 = vmul.f32 %v2753_v33, %v1706_v24 }
0x200f   :  { %1711 = vrot.lane.b32.xlu0 %v1708_v40, %s2796_s2 }
0x2010   :  { %v1159_v49 = vpop.permute.xlu0 %1158 }
0x2011   :  { %v1162_v5 = vsel %vm227_vm8, %v1161_v42, %v1159_v49 }
0x2012   :  { %v1163_v45 = vsel %vm1118_vm13, %v1162_v5, %v3168_v41 }
0x2013   :  { %v1164_v17 = vmul.f32 %v3347_v32, %v1163_v45 }
0x2014   :  { %v1170_v7 = vpop.permute.xlu0 %1169 }
0x2015   :  { %v1173_v11 = vsel %vm227_vm8, %v1172_v20, %v1170_v7  ;;  %2560 = vmatprep.mubr.f32.mxu1 %v1164_v17 }
0x2016   :  { %v1174_v22 = vsel %vm1118_vm13, %v1173_v11, %v3203_v62 }
0x2017   :  { %v1175_v55 = vmul.f32 %v3347_v32, %v1174_v22 }
0x2018   :  { %v1181_v16 = vpop.permute.xlu0 %1180 }
0x2019   :  { %v1184_v41 = vsel %vm227_vm8, %v1183_v13, %v1181_v16  ;;  %2561 = vmatmul.mubr.f32.gmra.mxu1 %v1175_v55 }
0x201a   :  { %v1185_v1 = vsel %vm1118_vm13, %v1184_v41, %v3220_v34 }
0x201b   :  { %v1186_v50 = vmul.f32 %v3347_v32, %v1185_v1 }
0x201c   :  { %v1192_v18 = vpop.permute.xlu0 %1191 }
0x201d   :  { %v1197_v57 = vsel %vm333_vm9, %v1188_v44, %v1192_v18  ;;  %2563 = vmatprep.mubr.f32.mxu1 %v1186_v50 }
0x201e   :  { %v1198_v62 = vsel %vm227_vm8, %v1197_v57, %v1195_v52 }
0x201f   :  { %v1199_v19 = vsel %vm1118_vm13, %v1198_v62, %v3312_v26 }
0x2020   :  { %v1200_v36 = vmul.f32 %v3347_v32, %v1199_v19 }
0x2022   :  { %2564 = vmatmul.mubr.f32.gmra.mxu1 %v1200_v36 }
0x2023   :  { %2618 = vmatprep.mubr.msk.f32.mxu1 %vm2793_vm1, %v2792_v0 }
0x2081   :  { %v1712_v59 = vpop.permute.xlu0 %1711 }
0x2082   :  { %2619 = vmatmul.mubr.msk.f32.vlgmr.msra.gmra.mxu1 %vm333_vm9, %v1712_v59 }
0x2083   :  { %2633 = vmatpush3.msra.mxu1 %v3288_v51  ;;  %2640 = vmatprep.mubr.msk.f32.mxu1 %vm2793_vm1, %v2792_v0 }
0x2084   :  { %2634 = vmatprep.subr.mxu1 %v2792_v0 }
0x2085   :  { %2635 = vmatpush3.msra.mxu1 %v3298_v12 }
0x2086   :  { %2636 = vmatprep.subr.mxu1 %v2792_v0 }
0x2087   :  { %2637 = vmatpush3.msra.mxu1 %v3308_v23 }
0x2088   :  { %2638 = vmatprep.subr.mxu1 %v2792_v0 }
0x2089   :  { %2639 = vmatpush3.msra.mxu1 %v3318_v27 }
0x20d9   :  { %v2562_v34 = vpop.f32.mrf.mxu1 }
0x20da   :  { %v1810_v8 = vadd.f32 %v2562_v34, %v3370_v47 }
0x20db   :  { %v1287_v26 = vpop.f32.mrf.mxu1 }
0x20dc   :  { %v1709_v60 = vadd.f32 %v3370_v47, %v1287_v26 }
0x20e2   :  { %v3498_v32 = vpop.f32.mrf.mxu1 }
0x20e3   :  { %v2012_v62 = vadd.f32 %v3498_v32, %v3370_v47 }
0x20e4   :  { %v3500_v53 = vpop.f32.mrf.mxu1 }
0x20e5   :  { %v1911_v2 = vadd.f32 %v3370_v47, %v3500_v53 }
0x2142   :  { %v1781_v61 = vpop.f32.mrf.mxu1 }
0x2143   :  { %v1785_v63 = vadd.f32 %v1781_v61, %v1709_v60 }
0x2144   :  { %v2620_v3 = vpop.f32.mrf.mxu1 }
0x2145   :  { %2756 = vtanh.f32 %v1785_v63  ;;  %v2189_v6 = vmul.f32 -1.442695, %v1785_v63 }
0x2147   :  { %2758 = vpow2.f32 %v2189_v6 }
0x2152   :  { %v2757_v4 = vpop.eup %2756 }
0x2153   :  { %1795 = vrot.lane.b32.xlu1 %v2757_v4, %s2795_s18 }
0x2154   :  { %v2759_v10 = vpop.eup %2758 }
0x2155   :  { %v1789_v15 = vadd.f32 1.0, %v2759_v10  ;;  %v2117_v10 = vrot.slane %v3376_v58, 4 }
0x2157   :  { %2760 = vrcp.f32 %v1789_v15  ;;  %v14_v15 = vstv %s3556_s8 }
0x2158   :  { %15 = vst [vmem:[#allocation2] sm:$0x1] %v14_v15 }
0x2164   :  { %v2761_v25 = vpop.eup %2760 }
0x2165   :  { %v1793_v30 = vmul.f32 %v2761_v25, %v3454_v14 }
0x21c5   :  { %v1796_v28 = vpop.permute.xlu1 %1795 }
0x21c6   :  { %v1798_v29 = vmul.f32 %v2761_v25, %v1796_v28 }
0x21c8   :  { %1800 = vrot.lane.b32.xlu0 %v1798_v29, %s2796_s2  ;;  %v2196_v29 = vld [vmem:[%s3557_s7] ss:$0 sm:$0xff] }
0x223a   :  { %v1801_v31 = vpop.permute.xlu0 %1800 }
0x223b   :  { %v1803_v56 = vadd.f32 %v1801_v31, %v1793_v30 }
0x223d   :  { %2762 = vtanh.f32 %v1803_v56 }
0x224a   :  { %v2763_v33 = vpop.eup %2762 }
0x224b   :  { %1806 = vrot.lane.b32.xlu1 %v2763_v33, %s2795_s18 }
0x22bd   :  { %v1807_v35 = vpop.permute.xlu1 %1806 }
0x22be   :  { %v1809_v9 = vmul.f32 %v2761_v25, %v1807_v35  ;;  %v2197_v35 = vld [vmem:[#allocation2] ss:$0 sm:$0xff] }
0x22c0   :  { %1812 = vrot.lane.b32.xlu0 %v1809_v9, %s2796_s2 }
0x2332   :  { %v1813_v37 = vpop.permute.xlu0 %1812 }
0x2333   :  { %2630 = vmatmul.mubr.msk.f32.vlgmr.msra.gmra.mxu0 %vm333_vm9, %v1813_v37 }
0x2334   :  { %2644 = vmatpush3.msra.mxu0 %v3288_v51  ;;  %2651 = vmatprep.mubr.msk.f32.mxu0 %vm2793_vm1, %v2792_v0 }
0x2335   :  { %2645 = vmatprep.subr.mxu0 %v2792_v0 }
0x2336   :  { %2646 = vmatpush3.msra.mxu0 %v3298_v12 }
0x2337   :  { %2647 = vmatprep.subr.mxu0 %v2792_v0 }
0x2338   :  { %2648 = vmatpush3.msra.mxu0 %v3308_v23 }
0x2339   :  { %2649 = vmatprep.subr.mxu0 %v2792_v0 }
0x233a   :  { %2650 = vmatpush3.msra.mxu0 %v3318_v27 }
0x23f3   :  { %v1882_v38 = vpop.f32.mrf.mxu0 }
0x23f4   :  { %v1886_v54 = vadd.f32 %v1882_v38, %v1810_v8 }
0x23f5   :  { %v2631_v51 = vpop.f32.mrf.mxu0 }
0x23f6   :  { %2764 = vtanh.f32 %v1886_v54  ;;  %v2191_v39 = vmul.f32 -1.442695, %v1886_v54 }
0x23f8   :  { %2766 = vpow2.f32 %v2191_v39 }
0x2403   :  { %v2765_v48 = vpop.eup %2764 }
0x2404   :  { %1896 = vrot.lane.b32.xlu1 %v2765_v48, %s2795_s18 }
0x2405   :  { %v2767_v12 = vpop.eup %2766 }
0x2406   :  { %v1890_v14 = vadd.f32 1.0, %v2767_v12 }
0x2408   :  { %2768 = vrcp.f32 %v1890_v14 }
0x2415   :  { %v2769_v43 = vpop.eup %2768 }
0x2416   :  { %v1894_v0 = vmul.f32 %v2769_v43, %v1803_v56 }
0x2476   :  { %v1897_v23 = vpop.permute.xlu1 %1896 }
0x2477   :  { %v1899_v46 = vmul.f32 %v2769_v43, %v1897_v23 }
0x2479   :  { %1901 = vrot.lane.b32.xlu0 %v1899_v46, %s2796_s2 }
0x24eb   :  { %v1902_v27 = vpop.permute.xlu0 %1901 }
0x24ec   :  { %v1904_v21 = vadd.f32 %v1902_v27, %v1894_v0 }
0x24ee   :  { %2770 = vtanh.f32 %v1904_v21 }
0x24fb   :  { %v2771_v24 = vpop.eup %2770 }
0x24fc   :  { %1907 = vrot.lane.b32.xlu1 %v2771_v24, %s2795_s18 }
0x256e   :  { %v1908_v40 = vpop.permute.xlu1 %1907 }
0x256f   :  { %v1910_v42 = vmul.f32 %v2769_v43, %v1908_v40 }
0x2571   :  { %1913 = vrot.lane.b32.xlu0 %v1910_v42, %s2796_s2 }
0x25e3   :  { %v1914_v49 = vpop.permute.xlu0 %1913 }
0x25e4   :  { %2641 = vmatmul.mubr.msk.f32.vlgmr.msra.gmra.mxu1 %vm333_vm9, %v1914_v49 }
0x26a4   :  { %v1983_v5 = vpop.f32.mrf.mxu1 }
0x26a5   :  { %v1987_v45 = vadd.f32 %v1983_v5, %v1911_v2 }
0x26a6   :  { %v2642_v17 = vpop.f32.mrf.mxu1 }
0x26a7   :  { %2772 = vtanh.f32 %v1987_v45  ;;  %v2193_v7 = vmul.f32 -1.442695, %v1987_v45 }
0x26a9   :  { %2774 = vpow2.f32 %v2193_v7 }
0x26b4   :  { %v2773_v20 = vpop.eup %2772 }
0x26b5   :  { %1997 = vrot.lane.b32.xlu1 %v2773_v20, %s2795_s18 }
0x26b6   :  { %v2775_v11 = vpop.eup %2774 }
0x26b7   :  { %v1991_v22 = vadd.f32 1.0, %v2775_v11 }
0x26b9   :  { %2776 = vrcp.f32 %v1991_v22 }
0x26c6   :  { %v2777_v44 = vpop.eup %2776 }
0x26c7   :  { %v1995_v16 = vmul.f32 %v2777_v44, %v1904_v21 }
0x2727   :  { %v1998_v55 = vpop.permute.xlu1 %1997 }
0x2728   :  { %v2000_v13 = vmul.f32 %v2777_v44, %v1998_v55 }
0x272a   :  { %2002 = vrot.lane.b32.xlu0 %v2000_v13, %s2796_s2 }
0x279c   :  { %v2003_v41 = vpop.permute.xlu0 %2002 }
0x279d   :  { %v2005_v1 = vadd.f32 %v2003_v41, %v1995_v16 }
0x279f   :  { %2778 = vtanh.f32 %v2005_v1 }
0x27ac   :  { %v2779_v50 = vpop.eup %2778 }
0x27ad   :  { %2008 = vrot.lane.b32.xlu1 %v2779_v50, %s2795_s18 }
0x281f   :  { %v2009_v18 = vpop.permute.xlu1 %2008 }
0x2820   :  { %v2011_v52 = vmul.f32 %v2777_v44, %v2009_v18 }
0x2822   :  { %2014 = vrot.lane.b32.xlu0 %v2011_v52, %s2796_s2 }
0x2894   :  { %v2015_v57 = vpop.permute.xlu0 %2014 }
0x2895   :  { %2652 = vmatmul.mubr.msk.f32.vlgmr.msra.gmra.mxu0 %vm333_vm9, %v2015_v57 }
0x2955   :  { %v2084_v19 = vpop.f32.mrf.mxu0 }
0x2956   :  { %v2088_v36 = vadd.f32 %v2084_v19, %v2012_v62 }
0x2957   :  { %v2653_v59 = vpop.f32.mrf.mxu0 }
0x2958   :  { %2780 = vtanh.f32 %v2088_v36  ;;  %v2195_v26 = vmul.f32 -1.442695, %v2088_v36 }
0x295a   :  { %2782 = vpow2.f32 %v2195_v26 }
0x2965   :  { %v2781_v34 = vpop.eup %2780 }
0x2966   :  { %2098 = vrot.lane.b32.xlu1 %v2781_v34, %s2795_s18 }
0x2967   :  { %v2783_v53 = vpop.eup %2782 }
0x2968   :  { %v2092_v60 = vadd.f32 1.0, %v2783_v53 }
0x296a   :  { %2784 = vrcp.f32 %v2092_v60 }
0x2977   :  { %v2785_v61 = vpop.eup %2784 }
0x2978   :  { %v2096_v4 = vmul.f32 %v2785_v61, %v2005_v1 }
0x29d8   :  { %v2099_v63 = vpop.permute.xlu1 %2098 }
0x29d9   :  { %v2101_v3 = vmul.f32 %v2785_v61, %v2099_v63 }
0x29db   :  { %2103 = vrot.lane.b32.xlu0 %v2101_v3, %s2796_s2 }
0x2a4d   :  { %v2104_v6 = vpop.permute.xlu0 %2103 }
0x2a4e   :  { %v2106_v47 = vadd.f32 %v2104_v6, %v2096_v4 }
0x2a50   :  { %2786 = vtanh.f32 %v2106_v47 }
0x2a5d   :  { %v2787_v32 = vpop.eup %2786 }
0x2a5e   :  { %2109 = vrot.lane.b32.xlu1 %v2787_v32, %s2795_s18 }
0x2a62   :  { %2118 = vrot.lane.b32.xlu1 %v2117_v10, %s2795_s18 }
0x2ad0   :  { %v2110_v25 = vpop.permute.xlu1 %2109 }
0x2ad1   :  { %v2112_v28 = vmul.f32 %v2785_v61, %v2110_v25 }
0x2ad3   :  { %2114 = vrot.lane.b32.xlu0 %v2112_v28, %s2796_s2 }
0x2ad4   :  { %v2119_v30 = vpop.permute.xlu1 %2118 }
0x2b45   :  { %v2115_v31 = vpop.permute.xlu0 %2114 }
0x2b46   :  { %v2121_v56 = vsel %vm333_vm9, %v2115_v31, %v2119_v30 }
0x2b47   :  { %v2129_v58 = vmul.f32 %v2196_v29, %v2121_v56 }
0x2b49   :  { %v2131_v33 = vsel %vm2130_vm14, %v2129_v58, 0.0 }
0x2b4a   :  { %2132 = vadd.xlane.f32.xlu0 %v2131_v33 }
0x2bd3   :  { %v2133_v9 = vpop.xlane.xlu0 %2132 }
0x2bd4   :  { %v2141_v37 = vadd.f32 %v2197_v35, %v2133_v9 }
0x2bd6   :  { %v2198_v8 = vmul.f32 -1.442695, %v2141_v37 }
0x2bd8   :  { %2788 = vpow2.f32 %v2198_v8 }
0x2be5   :  { %v2789_v38 = vpop.eup %2788 }
0x2be6   :  { %v2145_v54 = vadd.f32 1.0, %v2789_v38 }
0x2be8   :  { %2790 = vrcp.f32 %v2145_v54 }
0x2bf5   :  { %v2791_v51 = vpop.eup %2790 }
0x2bf6   :  { %2149 = vst.msk [vmem:[%s3558_s9] sm:$0xf] %vm2148_vm15, %v2791_v51 }

</bundles_post_ra>
